<compile_context>
chip_gen: v7x
topology: tpu7x:2x2x1
jax: 0.10.0
libtpu: 0.0.40
codegen_flags: <defaults>
</compile_context>

<pallas_src>
import functools

import jax
import jax.numpy as jnp
from jax.experimental import pallas as pl
from jax.experimental.pallas import tpu as pltpu

_LANE = 128
_SUBLANE = 8


def _round_up(n, m):
    return ((n + m - 1) // m) * m


def _rnn_kernel(num_layers, time_chunk, unroll, x_ref, *refs):
    """Grid = (batch_blocks, time_blocks); time axis is sequential ("arbitrary").

    refs = [W_ih_0, W_hh_0, b_0, ..., W_ih_{L-1}, W_hh_{L-1}, b_{L-1},
            W_fc, b_fc, out_ref, xproj_scratch, h_scratch_0, ..., h_scratch_{L-1}]
    """
    n_w = 3 * num_layers + 2
    w_refs = refs[:n_w]
    out_ref = refs[n_w]
    xproj_ref = refs[n_w + 1]
    h_refs = refs[n_w + 2:]

    w_ih = lambda l: w_refs[3 * l]          # (in_p, H_p) bf16
    w_hh = lambda l: w_refs[3 * l + 1]      # (H_p,  H_p) bf16
    bias = lambda l: w_refs[3 * l + 2]      # (1,    H_p) f32  (b_ih + b_hh)
    w_fc_ref = w_refs[3 * num_layers]       # (H_p,  C_p) bf16
    b_fc_ref = w_refs[3 * num_layers + 1]   # (1,    C_p) f32

    t_blk = pl.program_id(1)
    Tc = time_chunk
    B, Hp = h_refs[0].shape

    # Zero the persistent hidden state at the start of each batch block's time sweep.
    @pl.when(t_blk == 0)
    def _():
        for l in range(num_layers):
            h_refs[l][...] = jnp.zeros_like(h_refs[l])

    # ---- Hoisted layer-0 input projection (time-independent of the recurrence).
    # One big (Tc*B, I_p) x (I_p, H_p) MXU matmul + bias for the whole chunk, parked
    # in VMEM scratch; the serial loop for layer 0 only adds the recurrent h @ W_hh.
    Ip = x_ref.shape[2]
    x_chunk = x_ref[...].reshape(Tc * B, Ip).astype(jnp.bfloat16)
    xproj = jnp.dot(x_chunk, w_ih(0)[...], preferred_element_type=jnp.float32)
    xproj_ref[...] = (xproj + bias(0)[...]).reshape(Tc, B, Hp)

    # ---- Hoist weight / bias reads out of the serial time loop.
    w_hh_v = [w_hh(l)[...] for l in range(num_layers)]
    w_ih_v = [None] + [w_ih(l)[...] for l in range(1, num_layers)]
    b_v = [None] + [bias(l)[...] for l in range(1, num_layers)]

    # Hidden state carried in bf16 inside the loop (it is only ever a matmul input).
    h0 = tuple(h_refs[l][...].astype(jnp.bfloat16) for l in range(num_layers))

    def step(t, hs):
        # Layer 0: precomputed input term + recurrent term (no concat, no reload).
        pre = xproj_ref[t] + jnp.dot(hs[0], w_hh_v[0],
                                     preferred_element_type=jnp.float32)
        h_new = jnp.tanh(pre).astype(jnp.bfloat16)   # f32 tanh (v5e-safe EUP path)
        new_hs = [h_new]
        inp = h_new
        for l in range(1, num_layers):
            pre = (jnp.dot(inp, w_ih_v[l], preferred_element_type=jnp.float32)
                   + jnp.dot(hs[l], w_hh_v[l], preferred_element_type=jnp.float32)
                   + b_v[l])                          # implicit (1, H_p) broadcast
            h_new = jnp.tanh(pre).astype(jnp.bfloat16)
            new_hs.append(h_new)
            inp = h_new
        return tuple(new_hs)

    hs = jax.lax.fori_loop(0, Tc, step, h0, unroll=unroll)

    # Persist hidden state across time-chunk grid steps.
    for l in range(num_layers):
        h_refs[l][...] = hs[l].astype(jnp.float32)

    # Final Linear on the last timestep's top-layer hidden state.
    @pl.when(t_blk == pl.num_programs(1) - 1)
    def _():
        out_ref[...] = (jnp.dot(hs[num_layers - 1], w_fc_ref[...],
                                preferred_element_type=jnp.float32)
                        + b_fc_ref[...]).astype(out_ref.dtype)


def _pick_batch_block(batch):
    """Return (padded_batch, block): block is a multiple of 8 and <= 128 rows.

    Prefers >= 2 blocks (when the batch allows) so the 'parallel' batch axis can be
    sharded across both v7x TensorCores, while keeping blocks large enough to fill
    MXU rows; never silently drops to tiny blocks for large batches."""
    b_p = _round_up(batch, _SUBLANE)
    if b_p <= _SUBLANE:
        return b_p, b_p
    blk = min(128, _round_up((b_p + 1) // 2, _SUBLANE))
    return _round_up(b_p, blk), blk


def rnn_model_forward(x, packed_params, *, hidden_size, num_layers, num_classes,
                      time_chunk=32):
    """x: (B, T, I) batch-first f32. packed_params: output of pack_params()."""
    B, T, I = x.shape
    I_p = _round_up(I, _LANE)
    H_p = _round_up(hidden_size, _LANE)
    C_p = _round_up(num_classes, _LANE)
    B_pad, B_blk = _pick_batch_block(B)

    # Keep the per-chunk xproj scratch bounded (~4 MiB) for large hidden sizes.
    tc_cap = max(1, (4 << 20) // (B_blk * H_p * 4))
    Tc = max(1, min(time_chunk, T, tc_cap))
    # Largest divisor of T <= Tc (fake timesteps would change the recurrence).
    while T % Tc:
        Tc -= 1
    # NOTE: prime T degrades to Tc=1 (correct, but pays per-grid-step overhead per step).
    unroll = Tc if Tc <= 8 else 4

    # Single fused XLA prepass on x: batch-first -> time-major + zero pad to tiles.
    x_tm = jnp.transpose(x, (1, 0, 2))                            # (T, B, I)
    x_p = jnp.pad(x_tm, ((0, 0), (0, B_pad - B), (0, I_p - I)))   # (T, B_pad, I_p)

    in_specs = [pl.BlockSpec((Tc, B_blk, I_p), lambda b, t: (t, b, 0))]
    for p in packed_params:
        # Full-array blocks, constant index -> resident in VMEM, no re-fetch.
        in_specs.append(pl.BlockSpec(p.shape, lambda b, t: (0, 0)))

    # Explicit scoped-VMEM limit with headroom, capped below v7x's 64 MiB.
    w_bytes = sum(int(p.size) * p.dtype.itemsize for p in packed_params)
    x_bytes = Tc * B_blk * I_p * 4
    scratch_bytes = Tc * B_blk * H_p * 4 + num_layers * B_blk * H_p * 4
    out_bytes = B_blk * C_p * 4
    need = 2 * (x_bytes + w_bytes + out_bytes) + scratch_bytes
    vmem_limit = int(min(max(2 * need, 16 << 20), 60 << 20))

    out = pl.pallas_call(
        functools.partial(_rnn_kernel, num_layers, Tc, unroll),
        out_shape=jax.ShapeDtypeStruct((B_pad, C_p), jnp.float32),
        grid=(B_pad // B_blk, T // Tc),
        in_specs=in_specs,
        out_specs=pl.BlockSpec((B_blk, C_p), lambda b, t: (b, 0)),
        scratch_shapes=[pltpu.VMEM((Tc, B_blk, H_p), jnp.float32)]
                       + [pltpu.VMEM((B_blk, H_p), jnp.float32)
                          for _ in range(num_layers)],
        compiler_params=pltpu.CompilerParams(
            dimension_semantics=("parallel", "arbitrary"),
            vmem_limit_bytes=vmem_limit),
    )(x_p, *packed_params)

    return out[:B, :num_classes]


def make_params(key, input_size, hidden_size, num_layers, num_classes):
    """PyTorch-shaped synthetic init: W_ih (H,in), W_hh (H,H), b_ih (H,), b_hh (H,),
    fc.weight (C,H), fc.bias (C,)."""
    params = []
    bound = 1.0 / (hidden_size ** 0.5)
    for l in range(num_layers):
        in_dim = input_size if l == 0 else hidden_size
        key, k1, k2, k3, k4 = jax.random.split(key, 5)
        params += [
            jax.random.uniform(k1, (hidden_size, in_dim), jnp.float32, -bound, bound),
            jax.random.uniform(k2, (hidden_size, hidden_size), jnp.float32, -bound, bound),
            jax.random.uniform(k3, (hidden_size,), jnp.float32, -bound, bound),
            jax.random.uniform(k4, (hidden_size,), jnp.float32, -bound, bound),
        ]
    key, k1, k2 = jax.random.split(key, 3)
    params += [
        jax.random.uniform(k1, (num_classes, hidden_size), jnp.float32, -bound, bound),
        jax.random.uniform(k2, (num_classes,), jnp.float32, -bound, bound),
    ]
    return params


def pack_params(raw_params, *, hidden_size, num_layers, num_classes):
    """Build kernel weights: per layer transposed, zero-padded bf16 W_ih (in_p,H_p)
    and W_hh (H_p,H_p), plus an f32 (1,H_p) bias (b_ih+b_hh); then transposed/padded
    bf16 fc weight and f32 fc bias."""
    H_p = _round_up(hidden_size, _LANE)
    C_p = _round_up(num_classes, _LANE)
    packed = []
    for l in range(num_layers):
        w_ih, w_hh, b_ih, b_hh = raw_params[4 * l: 4 * l + 4]
        in_dim = w_ih.shape[1]
        in_p = _round_up(in_dim, _LANE)
        w_ih_p = (jnp.zeros((in_p, H_p), jnp.float32)
                  .at[:in_dim, :hidden_size].set(w_ih.T).astype(jnp.bfloat16))
        w_hh_p = (jnp.zeros((H_p, H_p), jnp.float32)
                  .at[:hidden_size, :hidden_size].set(w_hh.T).astype(jnp.bfloat16))
        b = jnp.zeros((1, H_p), jnp.float32).at[0, :hidden_size].set(b_ih + b_hh)
        packed += [w_ih_p, w_hh_p, b]
    w_fc, b_fc = raw_params[4 * num_layers: 4 * num_layers + 2]
    w_fc_p = (jnp.zeros((H_p, C_p), jnp.float32)
              .at[:hidden_size, :num_classes].set(w_fc.T).astype(jnp.bfloat16))
    b_fc_p = jnp.zeros((1, C_p), jnp.float32).at[0, :num_classes].set(b_fc)
    packed += [w_fc_p, b_fc_p]
    return packed


def rnn_reference(x, raw_params, *, num_layers, hidden_size, mxu_bf16):
    """Pure-JAX reference (PyTorch math); mxu_bf16=True mirrors the kernel's
    bf16-input / f32-accumulate matmuls for a tight comparison."""
    def mm(a, w):  # a @ w.T
        if mxu_bf16:
            return jnp.dot(a.astype(jnp.bfloat16), w.T.astype(jnp.bfloat16),
                           preferred_element_type=jnp.float32)
        return jnp.dot(a, w.T)

    B, T, _ = x.shape
    hs = [jnp.zeros((B, hidden_size), jnp.float32) for _ in range(num_layers)]
    for t in range(T):
        inp = x[:, t, :]
        for l in range(num_layers):
            w_ih, w_hh, b_ih, b_hh = raw_params[4 * l: 4 * l + 4]
            hs[l] = jnp.tanh(mm(inp, w_ih) + mm(hs[l], w_hh) + b_ih + b_hh)
            inp = hs[l]
    w_fc, b_fc = raw_params[4 * num_layers: 4 * num_layers + 2]
    return mm(hs[-1], w_fc) + b_fc


if __name__ == "__main__":
    batch, seq_len = 2, 8
    input_size, hidden_size, num_layers, num_classes = 16, 32, 2, 4

    key = jax.random.PRNGKey(0)
    kx, kp = jax.random.split(key)
    x = jax.random.normal(kx, (batch, seq_len, input_size), jnp.float32)
    raw = make_params(kp, input_size, hidden_size, num_layers, num_classes)
    packed = pack_params(raw, hidden_size=hidden_size, num_layers=num_layers,
                         num_classes=num_classes)

    # time_chunk=4 -> two time blocks: exercises the persistent VMEM hidden state
    # across grid steps as well as the hoisted per-chunk input projection.
    out = rnn_model_forward(x, packed, hidden_size=hidden_size,
                            num_layers=num_layers, num_classes=num_classes,
                            time_chunk=4)
    out = jax.block_until_ready(out)
    assert out.shape == (batch, num_classes)

    ref_mixed = rnn_reference(x, raw, num_layers=num_layers,
                              hidden_size=hidden_size, mxu_bf16=True)
    ref_f32 = rnn_reference(x, raw, num_layers=num_layers,
                            hidden_size=hidden_size, mxu_bf16=False)
    # Tight check vs a reference using the same bf16-MXU / f32-accumulate math.
    assert jnp.allclose(out, ref_mixed, atol=2e-3, rtol=2e-3), (out, ref_mixed)
    # Loose sanity check vs the exact f32 PyTorch-equivalent math.
    assert jnp.allclose(out, ref_f32, atol=1e-1, rtol=1e-1), (out, ref_f32)

    print("KERNEL_OK")
</pallas_src>

<mosaic_0001>
module attributes {stable_mosaic.version = 11 : i64} {
  func.func @_rnn_kernel(%arg0: i32, %arg1: i32, %arg2: memref<4x8x128xf32, #tpu.memory_space<vmem>>, %arg3: memref<128x128xbf16, #tpu.memory_space<vmem>>, %arg4: memref<128x128xbf16, #tpu.memory_space<vmem>>, %arg5: memref<1x128xf32, #tpu.memory_space<vmem>>, %arg6: memref<128x128xbf16, #tpu.memory_space<vmem>>, %arg7: memref<128x128xbf16, #tpu.memory_space<vmem>>, %arg8: memref<1x128xf32, #tpu.memory_space<vmem>>, %arg9: memref<128x128xbf16, #tpu.memory_space<vmem>>, %arg10: memref<1x128xf32, #tpu.memory_space<vmem>>, %arg11: memref<8x128xf32, #tpu.memory_space<vmem>>, %arg12: memref<4x8x128xf32, #tpu.memory_space<vmem>>, %arg13: memref<8x128xf32, #tpu.memory_space<vmem>>, %arg14: memref<8x128xf32, #tpu.memory_space<vmem>>) attributes {dimension_semantics = [#tpu.dimension_semantics<parallel>, #tpu.dimension_semantics<arbitrary>], iteration_bounds = array<i64: 1, 2>, scalar_prefetch = 0 : i64, scratch_operands = 3 : i64, tpu.core_type = #tpu.core_type<tc>, window_params = [{transform_indices = @transform_0, window_bounds = array<i64: 4, 8, 128>}, {pipeline_mode = #tpu.pipeline_mode<synchronous>, transform_indices = @transform_1, window_bounds = array<i64: 128, 128>}, {pipeline_mode = #tpu.pipeline_mode<synchronous>, transform_indices = @transform_2, window_bounds = array<i64: 128, 128>}, {pipeline_mode = #tpu.pipeline_mode<synchronous>, transform_indices = @transform_3, window_bounds = array<i64: 1, 128>}, {pipeline_mode = #tpu.pipeline_mode<synchronous>, transform_indices = @transform_4, window_bounds = array<i64: 128, 128>}, {pipeline_mode = #tpu.pipeline_mode<synchronous>, transform_indices = @transform_5, window_bounds = array<i64: 128, 128>}, {pipeline_mode = #tpu.pipeline_mode<synchronous>, transform_indices = @transform_6, window_bounds = array<i64: 1, 128>}, {pipeline_mode = #tpu.pipeline_mode<synchronous>, transform_indices = @transform_7, window_bounds = array<i64: 128, 128>}, {pipeline_mode = #tpu.pipeline_mode<synchronous>, transform_indices = @transform_8, window_bounds = array<i64: 1, 128>}, {transform_indices = @transform_9, window_bounds = array<i64: 8, 128>}]} {
    %c0_i32 = arith.constant 0 : i32
    %0 = arith.cmpi eq, %arg1, %c0_i32 : i32
    %1 = arith.extui %0 : i1 to i32
    %c0_i32_0 = arith.constant 0 : i32
    %2 = arith.cmpi ne, %1, %c0_i32_0 : i32
    scf.if %2 {
      %cst_49 = arith.constant 0.000000e+00 : f32
      %84 = vector.broadcast %cst_49 : f32 to vector<8x128xf32>
      %c0_50 = arith.constant 0 : index
      %c0_51 = arith.constant 0 : index
      %85 = vector.load %arg13[%c0_50, %c0_51] : memref<8x128xf32, #tpu.memory_space<vmem>>, vector<8x128xf32>
      tpu.vector_store %arg13[%c0_50, %c0_51], %84 {strides = array<i32>} : memref<8x128xf32, #tpu.memory_space<vmem>>, vector<8x128xf32>,
      %cst_52 = arith.constant 0.000000e+00 : f32
      %86 = vector.broadcast %cst_52 : f32 to vector<8x128xf32>
      %c0_53 = arith.constant 0 : index
      %c0_54 = arith.constant 0 : index
      %87 = vector.load %arg14[%c0_53, %c0_54] : memref<8x128xf32, #tpu.memory_space<vmem>>, vector<8x128xf32>
      tpu.vector_store %arg14[%c0_53, %c0_54], %86 {strides = array<i32>} : memref<8x128xf32, #tpu.memory_space<vmem>>, vector<8x128xf32>,
    } else {
    }
    %c0 = arith.constant 0 : index
    %c0_1 = arith.constant 0 : index
    %c0_2 = arith.constant 0 : index
    %3 = vector.load %arg2[%c0, %c0_1, %c0_2] : memref<4x8x128xf32, #tpu.memory_space<vmem>>, vector<4x8x128xf32>
    %4 = vector.shape_cast %3 : vector<4x8x128xf32> to vector<32x128xf32>
    %5 = arith.truncf %4 : vector<32x128xf32> to vector<32x128xbf16>
    %c0_3 = arith.constant 0 : index
    %c0_4 = arith.constant 0 : index
    %6 = vector.load %arg3[%c0_3, %c0_4] : memref<128x128xbf16, #tpu.memory_space<vmem>>, vector<128x128xbf16>
    %cst = arith.constant dense<0.000000e+00> : vector<32x128xf32>
    %7 = tpu.matmul %5, %6, %cst {dimension_numbers = #tpu.dot_dimension_numbers<[1], [0], [0], [1], [0, 0, 1, 1], [], []>} : vector<32x128xbf16>, vector<128x128xbf16>, vector<32x128xf32> -> vector<32x128xf32>
    %c0_5 = arith.constant 0 : index
    %c0_6 = arith.constant 0 : index
    %8 = vector.load %arg5[%c0_5, %c0_6] : memref<1x128xf32, #tpu.memory_space<vmem>>, vector<1x128xf32>
    %9 = vector.broadcast %8 : vector<1x128xf32> to vector<32x128xf32>
    %10 = arith.addf %7, %9 : vector<32x128xf32>
    %11 = vector.shape_cast %10 : vector<32x128xf32> to vector<4x8x128xf32>
    %c0_7 = arith.constant 0 : index
    %c0_8 = arith.constant 0 : index
    %c0_9 = arith.constant 0 : index
    %12 = vector.load %arg12[%c0_7, %c0_8, %c0_9] : memref<4x8x128xf32, #tpu.memory_space<vmem>>, vector<4x8x128xf32>
    tpu.vector_store %arg12[%c0_7, %c0_8, %c0_9], %11 {strides = array<i32>} : memref<4x8x128xf32, #tpu.memory_space<vmem>>, vector<4x8x128xf32>,
    %c0_10 = arith.constant 0 : index
    %c0_11 = arith.constant 0 : index
    %13 = vector.load %arg4[%c0_10, %c0_11] : memref<128x128xbf16, #tpu.memory_space<vmem>>, vector<128x128xbf16>
    %c0_12 = arith.constant 0 : index
    %c0_13 = arith.constant 0 : index
    %14 = vector.load %arg7[%c0_12, %c0_13] : memref<128x128xbf16, #tpu.memory_space<vmem>>, vector<128x128xbf16>
    %c0_14 = arith.constant 0 : index
    %c0_15 = arith.constant 0 : index
    %15 = vector.load %arg6[%c0_14, %c0_15] : memref<128x128xbf16, #tpu.memory_space<vmem>>, vector<128x128xbf16>
    %c0_16 = arith.constant 0 : index
    %c0_17 = arith.constant 0 : index
    %16 = vector.load %arg8[%c0_16, %c0_17] : memref<1x128xf32, #tpu.memory_space<vmem>>, vector<1x128xf32>
    %c0_18 = arith.constant 0 : index
    %c0_19 = arith.constant 0 : index
    %17 = vector.load %arg13[%c0_18, %c0_19] : memref<8x128xf32, #tpu.memory_space<vmem>>, vector<8x128xf32>
    %18 = arith.truncf %17 : vector<8x128xf32> to vector<8x128xbf16>
    %c0_20 = arith.constant 0 : index
    %c0_21 = arith.constant 0 : index
    %19 = vector.load %arg14[%c0_20, %c0_21] : memref<8x128xf32, #tpu.memory_space<vmem>>, vector<8x128xf32>
    %20 = arith.truncf %19 : vector<8x128xf32> to vector<8x128xbf16>
    %c0_i32_22 = arith.constant 0 : i32
    %21 = arith.index_cast %c0_i32_22 : i32 to index
    %c0_23 = arith.constant 0 : index
    %c0_24 = arith.constant 0 : index
    %22 = vector.load %arg12[%21, %c0_23, %c0_24] : memref<4x8x128xf32, #tpu.memory_space<vmem>>, vector<1x8x128xf32>
    %23 = vector.shape_cast %22 : vector<1x8x128xf32> to vector<8x128xf32>
    %cst_25 = arith.constant dense<0.000000e+00> : vector<8x128xf32>
    %24 = tpu.matmul %18, %13, %cst_25 {dimension_numbers = #tpu.dot_dimension_numbers<[1], [0], [0], [1], [0, 0, 1, 1], [], []>} : vector<8x128xbf16>, vector<128x128xbf16>, vector<8x128xf32> -> vector<8x128xf32>
    %25 = arith.addf %23, %24 : vector<8x128xf32>
    %26 = math.tanh %25 : vector<8x128xf32>
    %27 = arith.truncf %26 : vector<8x128xf32> to vector<8x128xbf16>
    %cst_26 = arith.constant dense<0.000000e+00> : vector<8x128xf32>
    %28 = tpu.matmul %27, %15, %cst_26 {dimension_numbers = #tpu.dot_dimension_numbers<[1], [0], [0], [1], [0, 0, 1, 1], [], []>} : vector<8x128xbf16>, vector<128x128xbf16>, vector<8x128xf32> -> vector<8x128xf32>
    %cst_27 = arith.constant dense<0.000000e+00> : vector<8x128xf32>
    %29 = tpu.matmul %20, %14, %cst_27 {dimension_numbers = #tpu.dot_dimension_numbers<[1], [0], [0], [1], [0, 0, 1, 1], [], []>} : vector<8x128xbf16>, vector<128x128xbf16>, vector<8x128xf32> -> vector<8x128xf32>
    %30 = arith.addf %28, %29 : vector<8x128xf32>
    %31 = vector.broadcast %16 : vector<1x128xf32> to vector<8x128xf32>
    %32 = arith.addf %30, %31 : vector<8x128xf32>
    %33 = math.tanh %32 : vector<8x128xf32>
    %34 = arith.truncf %33 : vector<8x128xf32> to vector<8x128xbf16>
    %c1_i32 = arith.constant 1 : i32
    %35 = arith.index_cast %c1_i32 : i32 to index
    %c0_28 = arith.constant 0 : index
    %c0_29 = arith.constant 0 : index
    %36 = vector.load %arg12[%35, %c0_28, %c0_29] : memref<4x8x128xf32, #tpu.memory_space<vmem>>, vector<1x8x128xf32>
    %37 = vector.shape_cast %36 : vector<1x8x128xf32> to vector<8x128xf32>
    %cst_30 = arith.constant dense<0.000000e+00> : vector<8x128xf32>
    %38 = tpu.matmul %27, %13, %cst_30 {dimension_numbers = #tpu.dot_dimension_numbers<[1], [0], [0], [1], [0, 0, 1, 1], [], []>} : vector<8x128xbf16>, vector<128x128xbf16>, vector<8x128xf32> -> vector<8x128xf32>
    %39 = arith.addf %37, %38 : vector<8x128xf32>
    %40 = math.tanh %39 : vector<8x128xf32>
    %41 = arith.truncf %40 : vector<8x128xf32> to vector<8x128xbf16>
    %cst_31 = arith.constant dense<0.000000e+00> : vector<8x128xf32>
    %42 = tpu.matmul %41, %15, %cst_31 {dimension_numbers = #tpu.dot_dimension_numbers<[1], [0], [0], [1], [0, 0, 1, 1], [], []>} : vector<8x128xbf16>, vector<128x128xbf16>, vector<8x128xf32> -> vector<8x128xf32>
    %cst_32 = arith.constant dense<0.000000e+00> : vector<8x128xf32>
    %43 = tpu.matmul %34, %14, %cst_32 {dimension_numbers = #tpu.dot_dimension_numbers<[1], [0], [0], [1], [0, 0, 1, 1], [], []>} : vector<8x128xbf16>, vector<128x128xbf16>, vector<8x128xf32> -> vector<8x128xf32>
    %44 = arith.addf %42, %43 : vector<8x128xf32>
    %45 = vector.broadcast %16 : vector<1x128xf32> to vector<8x128xf32>
    %46 = arith.addf %44, %45 : vector<8x128xf32>
    %47 = math.tanh %46 : vector<8x128xf32>
    %48 = arith.truncf %47 : vector<8x128xf32> to vector<8x128xbf16>
    %c2_i32 = arith.constant 2 : i32
    %49 = arith.index_cast %c2_i32 : i32 to index
    %c0_33 = arith.constant 0 : index
    %c0_34 = arith.constant 0 : index
    %50 = vector.load %arg12[%49, %c0_33, %c0_34] : memref<4x8x128xf32, #tpu.memory_space<vmem>>, vector<1x8x128xf32>
    %51 = vector.shape_cast %50 : vector<1x8x128xf32> to vector<8x128xf32>
    %cst_35 = arith.constant dense<0.000000e+00> : vector<8x128xf32>
    %52 = tpu.matmul %41, %13, %cst_35 {dimension_numbers = #tpu.dot_dimension_numbers<[1], [0], [0], [1], [0, 0, 1, 1], [], []>} : vector<8x128xbf16>, vector<128x128xbf16>, vector<8x128xf32> -> vector<8x128xf32>
    %53 = arith.addf %51, %52 : vector<8x128xf32>
    %54 = math.tanh %53 : vector<8x128xf32>
    %55 = arith.truncf %54 : vector<8x128xf32> to vector<8x128xbf16>
    %cst_36 = arith.constant dense<0.000000e+00> : vector<8x128xf32>
    %56 = tpu.matmul %55, %15, %cst_36 {dimension_numbers = #tpu.dot_dimension_numbers<[1], [0], [0], [1], [0, 0, 1, 1], [], []>} : vector<8x128xbf16>, vector<128x128xbf16>, vector<8x128xf32> -> vector<8x128xf32>
    %cst_37 = arith.constant dense<0.000000e+00> : vector<8x128xf32>
    %57 = tpu.matmul %48, %14, %cst_37 {dimension_numbers = #tpu.dot_dimension_numbers<[1], [0], [0], [1], [0, 0, 1, 1], [], []>} : vector<8x128xbf16>, vector<128x128xbf16>, vector<8x128xf32> -> vector<8x128xf32>
    %58 = arith.addf %56, %57 : vector<8x128xf32>
    %59 = vector.broadcast %16 : vector<1x128xf32> to vector<8x128xf32>
    %60 = arith.addf %58, %59 : vector<8x128xf32>
    %61 = math.tanh %60 : vector<8x128xf32>
    %62 = arith.truncf %61 : vector<8x128xf32> to vector<8x128xbf16>
    %c3_i32 = arith.constant 3 : i32
    %63 = arith.index_cast %c3_i32 : i32 to index
    %c0_38 = arith.constant 0 : index
    %c0_39 = arith.constant 0 : index
    %64 = vector.load %arg12[%63, %c0_38, %c0_39] : memref<4x8x128xf32, #tpu.memory_space<vmem>>, vector<1x8x128xf32>
    %65 = vector.shape_cast %64 : vector<1x8x128xf32> to vector<8x128xf32>
    %cst_40 = arith.constant dense<0.000000e+00> : vector<8x128xf32>
    %66 = tpu.matmul %55, %13, %cst_40 {dimension_numbers = #tpu.dot_dimension_numbers<[1], [0], [0], [1], [0, 0, 1, 1], [], []>} : vector<8x128xbf16>, vector<128x128xbf16>, vector<8x128xf32> -> vector<8x128xf32>
    %67 = arith.addf %65, %66 : vector<8x128xf32>
    %68 = math.tanh %67 : vector<8x128xf32>
    %69 = arith.truncf %68 : vector<8x128xf32> to vector<8x128xbf16>
    %cst_41 = arith.constant dense<0.000000e+00> : vector<8x128xf32>
    %70 = tpu.matmul %69, %15, %cst_41 {dimension_numbers = #tpu.dot_dimension_numbers<[1], [0], [0], [1], [0, 0, 1, 1], [], []>} : vector<8x128xbf16>, vector<128x128xbf16>, vector<8x128xf32> -> vector<8x128xf32>
    %cst_42 = arith.constant dense<0.000000e+00> : vector<8x128xf32>
    %71 = tpu.matmul %62, %14, %cst_42 {dimension_numbers = #tpu.dot_dimension_numbers<[1], [0], [0], [1], [0, 0, 1, 1], [], []>} : vector<8x128xbf16>, vector<128x128xbf16>, vector<8x128xf32> -> vector<8x128xf32>
    %72 = arith.addf %70, %71 : vector<8x128xf32>
    %73 = vector.broadcast %16 : vector<1x128xf32> to vector<8x128xf32>
    %74 = arith.addf %72, %73 : vector<8x128xf32>
    %75 = math.tanh %74 : vector<8x128xf32>
    %76 = arith.truncf %75 : vector<8x128xf32> to vector<8x128xbf16>
    %c4_i32 = arith.constant 4 : i32
    %77 = arith.extf %69 : vector<8x128xbf16> to vector<8x128xf32>
    %c0_43 = arith.constant 0 : index
    %c0_44 = arith.constant 0 : index
    %78 = vector.load %arg13[%c0_43, %c0_44] : memref<8x128xf32, #tpu.memory_space<vmem>>, vector<8x128xf32>
    tpu.vector_store %arg13[%c0_43, %c0_44], %77 {strides = array<i32>} : memref<8x128xf32, #tpu.memory_space<vmem>>, vector<8x128xf32>,
    %79 = arith.extf %76 : vector<8x128xbf16> to vector<8x128xf32>
    %c0_45 = arith.constant 0 : index
    %c0_46 = arith.constant 0 : index
    %80 = vector.load %arg14[%c0_45, %c0_46] : memref<8x128xf32, #tpu.memory_space<vmem>>, vector<8x128xf32>
    tpu.vector_store %arg14[%c0_45, %c0_46], %79 {strides = array<i32>} : memref<8x128xf32, #tpu.memory_space<vmem>>, vector<8x128xf32>,
    %c1_i32_47 = arith.constant 1 : i32
    %81 = arith.cmpi eq, %arg1, %c1_i32_47 : i32
    %82 = arith.extui %81 : i1 to i32
    %c0_i32_48 = arith.constant 0 : i32
    %83 = arith.cmpi ne, %82, %c0_i32_48 : i32
    scf.if %83 {
      %c0_49 = arith.constant 0 : index
      %c0_50 = arith.constant 0 : index
      %84 = vector.load %arg9[%c0_49, %c0_50] : memref<128x128xbf16, #tpu.memory_space<vmem>>, vector<128x128xbf16>
      %cst_51 = arith.constant dense<0.000000e+00> : vector<8x128xf32>
      %85 = tpu.matmul %76, %84, %cst_51 {dimension_numbers = #tpu.dot_dimension_numbers<[1], [0], [0], [1], [0, 0, 1, 1], [], []>} : vector<8x128xbf16>, vector<128x128xbf16>, vector<8x128xf32> -> vector<8x128xf32>
      %c0_52 = arith.constant 0 : index
      %c0_53 = arith.constant 0 : index
      %86 = vector.load %arg10[%c0_52, %c0_53] : memref<1x128xf32, #tpu.memory_space<vmem>>, vector<1x128xf32>
      %87 = vector.broadcast %86 : vector<1x128xf32> to vector<8x128xf32>
      %88 = arith.addf %85, %87 : vector<8x128xf32>
      %c0_54 = arith.constant 0 : index
      %c0_55 = arith.constant 0 : index
      %89 = vector.load %arg11[%c0_54, %c0_55] : memref<8x128xf32, #tpu.memory_space<vmem>>, vector<8x128xf32>
      tpu.vector_store %arg11[%c0_54, %c0_55], %88 {strides = array<i32>} : memref<8x128xf32, #tpu.memory_space<vmem>>, vector<8x128xf32>,
    } else {
    }
    return
  }
  func.func @transform_0(%arg0: i32, %arg1: i32) -> (i32, i32, i32) {
    %c0_i32 = arith.constant 0 : i32
    %c0_i32_0 = arith.constant 0 : i32
    return %arg1, %arg0, %c0_i32 : i32, i32, i32
  }
  func.func @transform_1(%arg0: i32, %arg1: i32) -> (i32, i32) {
    %c0_i32 = arith.constant 0 : i32
    %c0_i32_0 = arith.constant 0 : i32
    %c0_i32_1 = arith.constant 0 : i32
    return %c0_i32, %c0_i32_0 : i32, i32
  }
  func.func @transform_2(%arg0: i32, %arg1: i32) -> (i32, i32) {
    %c0_i32 = arith.constant 0 : i32
    %c0_i32_0 = arith.constant 0 : i32
    %c0_i32_1 = arith.constant 0 : i32
    return %c0_i32, %c0_i32_0 : i32, i32
  }
  func.func @transform_3(%arg0: i32, %arg1: i32) -> (i32, i32) {
    %c0_i32 = arith.constant 0 : i32
    %c0_i32_0 = arith.constant 0 : i32
    %c0_i32_1 = arith.constant 0 : i32
    return %c0_i32, %c0_i32_0 : i32, i32
  }
  func.func @transform_4(%arg0: i32, %arg1: i32) -> (i32, i32) {
    %c0_i32 = arith.constant 0 : i32
    %c0_i32_0 = arith.constant 0 : i32
    %c0_i32_1 = arith.constant 0 : i32
    return %c0_i32, %c0_i32_0 : i32, i32
  }
  func.func @transform_5(%arg0: i32, %arg1: i32) -> (i32, i32) {
    %c0_i32 = arith.constant 0 : i32
    %c0_i32_0 = arith.constant 0 : i32
    %c0_i32_1 = arith.constant 0 : i32
    return %c0_i32, %c0_i32_0 : i32, i32
  }
  func.func @transform_6(%arg0: i32, %arg1: i32) -> (i32, i32) {
    %c0_i32 = arith.constant 0 : i32
    %c0_i32_0 = arith.constant 0 : i32
    %c0_i32_1 = arith.constant 0 : i32
    return %c0_i32, %c0_i32_0 : i32, i32
  }
  func.func @transform_7(%arg0: i32, %arg1: i32) -> (i32, i32) {
    %c0_i32 = arith.constant 0 : i32
    %c0_i32_0 = arith.constant 0 : i32
    %c0_i32_1 = arith.constant 0 : i32
    return %c0_i32, %c0_i32_0 : i32, i32
  }
  func.func @transform_8(%arg0: i32, %arg1: i32) -> (i32, i32) {
    %c0_i32 = arith.constant 0 : i32
    %c0_i32_0 = arith.constant 0 : i32
    %c0_i32_1 = arith.constant 0 : i32
    return %c0_i32, %c0_i32_0 : i32, i32
  }
  func.func @transform_9(%arg0: i32, %arg1: i32) -> (i32, i32) {
    %c0_i32 = arith.constant 0 : i32
    %c0_i32_0 = arith.constant 0 : i32
    return %arg0, %c0_i32 : i32, i32
  }
}

</mosaic_0001>

<bundles_post_ra>
// kernel: tpu_custom_call.1
= control target key start
LH: loop header
LB: loop body
LE: loop exit
PB: predicated region body
PF: predicated region fallthrough
CT: control target
= control target key end

     0   :  { %s3112_s0 = inlined_call_operand.hbm [shape: f32[8,8,128], index: 0, kind: input, shape index: {}]   ;;  %s3113_s1 = inlined_call_operand.hbm [shape: bf16[128,128], index: 1, kind: input, shape index: {}]   ;;  %s3114_s2 = inlined_call_operand.hbm [shape: bf16[128,128], index: 2, kind: input, shape index: {}]   ;;  %s3115_s3 = inlined_call_operand.vmem [shape: f32[1,128], index: 3, kind: input, shape index: {}]   ;;  %s3116_s4 = inlined_call_operand.hbm [shape: bf16[128,128], index: 4, kind: input, shape index: {}]   ;;  %s3117_s5 = inlined_call_operand.hbm [shape: bf16[128,128], index: 5, kind: input, shape index: {}]   ;;  %s3118_s6 = inlined_call_operand.vmem [shape: f32[1,128], index: 6, kind: input, shape index: {}]   ;;  %s3119_s7 = inlined_call_operand.hbm [shape: bf16[128,128], index: 7, kind: input, shape index: {}]   ;;  %s3120_s8 = inlined_call_operand.vmem [shape: f32[1,128], index: 8, kind: input, shape index: {}]   ;;  %s3121_s9 = inlined_call_operand.hbm [shape: f32[8,128], index: 9, kind: output, shape index: {}]  }
   0x1   :  { %3127 = sst [smem:[#allocation22_spill]] %s3113_s1 }
   0x2   :  { %3128 = sst [smem:[#allocation23_spill]] %s3118_s6 }
   0x3   :  { %3129 = sst [smem:[#allocation24_spill]] %s3120_s8 }
   0x4   :  { %3130 = sst [smem:[#allocation25_spill]] %s3121_s9 }
   0x5   :  { %14 = vsyncpa [#allocation6], 0 }
   0x6   :  { %16 = vsyncpa [#allocation6 + $0x1], 0 }
   0x7   :  { %17 = vsyncpa [#allocation9], 0 }
   0x8   :  { %18 = vsyncpa [#allocation12], 0 }
   0x9   :  { %19 = vsyncpa [#allocation15], 0 }
   0xa   :  { %20 = vsyncpa [#allocation7], 0  ;;  %s2507_s30 = smov 0   ;;  %s2509_s10 = smov 0  }
   0xb   :  { %s2511_s11 = smov 0   ;;  %s2513_s12 = smov 0  }
   0xc   :  { %s2515_s13 = smov 0   ;;  %s2517_s14 = smov 0  }
   0xd LB: > { %s3122_s15 = sadd.s32 4294967295, %s2439_s14   ;;  %p1525_p0 = scmp.ge.s32.totalorder %s2439_s14, 1  ;;  %s2439_s14 = sphi %s2517_s14, %s26_s14   ;;  %s2435_s13 = sphi %s2515_s13, %s3151_s13   ;;  %s2431_s12 = sphi %s2513_s12, %s3150_s12   ;;  %s2427_s11 = sphi %s2511_s11, %s3149_s11   ;;  %s2423_s10 = sphi %s2509_s10, %s3148_s10   ;;  %s2419_s30 = sphi %s2507_s30, %s3147_s30  }
   0xe   : > { %p2541_p1 = scmp.eq.s32.totalorder %s3122_s15, 0  ;;  %p265_p2 = scmp.lt.s32.totalorder %s2439_s14, 3 }
   0xf   : > { %s2441_s18 = smov [#allocation8]   ;;  %s2442_s21 = smov [#allocation11]  }
  0x10   : > { %s3131_s16 = scalar_select %p2541_p1, 1, 0 }
  0x11   : > { %p2546_p3 = pnand %p1525_p0, %p265_p2  ;;  %s277_s19 = sshll.u32 %s2441_s18, 4  ;;  %s2550_s19 = int_to_ptr.vmem [resolvable:$true] %s277_s19 }
  0x12   : > { %s306_s22 = sshll.u32 %s2442_s21, 4  ;;  %s2443_s23 = smov [#allocation10]   ;;  %s2560_s22 = int_to_ptr.vmem [resolvable:$true] %s306_s22 }
  0x13   : > { %s3132_s17 = scalar_select %p2546_p3, 1, 0 }
  0x14   : > { %p2025_p4 = pneg %p2546_p3  ;;  %s2562_s24 = sshll.u32 %s2443_s23, 4  ;;  %s291_s24 = int_to_ptr.vmem [resolvable:$true] %s2562_s24 }
  0x15   : > { %s3134_s1 = sld [smem:[#allocation22_spill]] }
  0x16   : > { %p2556_p5 = pnand %p2025_p4, %p2541_p1 }
  0x18   : > { %p2572_p7 = pneg %p2556_p5 }
  0x1b   : > { %s2177_s27 = scalar_lea.hbm %s3134_s1, 1024 }
  0x1c   : > { %p2178_p6 = scmp.ne.s32.totalorder %s3134_s1, %s2177_s27  ;;  %p2184_p10 = scmp.lt.u32.totalorder %s2177_s27, %s3134_s1 }
  0x1e   : > { %p2180_p8 = pnand %p2572_p7, %p2178_p6 }
  0x20   : > { %p2181_p9 = pneg %p2180_p8 }
  0x22   : > { %p2186_p11 = pnand %p2184_p10, %p2181_p9 }
  0x24   : > { %2189 = shalt.err (!%p2186_p11)
}
  0x25   : > { %s2190_s25 = scalar_lea.vmem %s2550_s19, 1024  ;;  %p2198_p2 = scmp.lt.s32.totalorder %s2550_s19, %s2550_s19 }
  0x26   : > { %p2191_p12 = scmp.ne.s32.totalorder %s2550_s19, %s2190_s25  ;;  %p2199_p4 = scmp.lt.s32.totalorder %s2190_s25, %s2190_s25 }
  0x28   : > { %p2193_p13 = pnand %p2191_p12, %p2572_p7  ;;  %p2200_p6 = por %p2199_p4, %p2198_p2 }
  0x2a   : > { %p2194_p0 = pneg %p2193_p13 }
  0x2c   : > { %p2201_p8 = pnand %p2200_p6, %p2194_p0 }
  0x2e   : > { %2204 = shalt.err (!%p2201_p8)
}
  0x2f   : > { %s2444_s26 = smov 64   ;;  %s2445_s27 = smov 4  }
  0x30   : > { %2028 = dma.hbm_to_vmem [thread:$0]  (!%p2556_p5), %s3134_s1, 1024, %s2550_s19, [#allocation9], %s2444_s26, %s2444_s26, %s2445_s27  }
  0x31   : > { %s2205_s25 = scalar_lea.hbm %s3116_s4, 1024 }
  0x32   : > { %p2206_p9 = scmp.ne.s32.totalorder %s3116_s4, %s2205_s25  ;;  %p2212_p12 = scmp.lt.u32.totalorder %s2205_s25, %s3116_s4 }
  0x34   : > { %p2208_p10 = pnand %p2206_p9, %p2572_p7 }
  0x36   : > { %p2209_p11 = pneg %p2208_p10 }
  0x38   : > { %p2214_p13 = pnand %p2212_p12, %p2209_p11 }
  0x3a   : > { %2217 = shalt.err (!%p2214_p13)
}
  0x3b   : > { %s2218_s19 = scalar_lea.vmem %s2560_s22, 1024  ;;  %p2226_p6 = scmp.lt.s32.totalorder %s2560_s22, %s2560_s22 }
  0x3c   : > { %p2219_p0 = scmp.ne.s32.totalorder %s2560_s22, %s2218_s19  ;;  %p2227_p8 = scmp.lt.s32.totalorder %s2218_s19, %s2218_s19 }
  0x3e   : > { %p2221_p2 = pnand %p2219_p0, %p2572_p7  ;;  %p2228_p9 = por %p2227_p8, %p2226_p6 }
  0x40   : > { %p2222_p4 = pneg %p2221_p2 }
  0x42   : > { %p2229_p10 = pnand %p2228_p9, %p2222_p4 }
  0x44   : > { %2232 = shalt.err (!%p2229_p10)
}
  0x45   : > { %2034 = dma.hbm_to_vmem [thread:$0]  (!%p2556_p5), %s3116_s4, 1024, %s2560_s22, [#allocation12], %s2444_s26, %s2444_s26, %s2445_s27  }
  0x46   : > { %s2233_s28 = scalar_lea.hbm %s3114_s2, 1024 }
  0x47   : > { %p2234_p11 = scmp.ne.s32.totalorder %s3114_s2, %s2233_s28  ;;  %p2240_p0 = scmp.lt.u32.totalorder %s2233_s28, %s3114_s2 }
  0x49   : > { %p2236_p12 = pnand %p2234_p11, %p2572_p7 }
  0x4b   : > { %p2237_p13 = pneg %p2236_p12 }
  0x4d   : > { %p2242_p2 = pnand %p2240_p0, %p2237_p13 }
  0x4f   : > { %2245 = shalt.err (!%p2242_p2)
}
  0x50   : > { %s2246_s19 = scalar_lea.vmem %s291_s24, 1024  ;;  %p2254_p9 = scmp.lt.s32.totalorder %s291_s24, %s291_s24 }
  0x51   : > { %p2247_p4 = scmp.ne.s32.totalorder %s291_s24, %s2246_s19  ;;  %p2255_p10 = scmp.lt.s32.totalorder %s2246_s19, %s2246_s19 }
  0x53   : > { %p2249_p6 = pnand %p2247_p4, %p2572_p7  ;;  %p2256_p3 = por %p2255_p10, %p2254_p9 }
  0x55   : > { %p2250_p8 = pneg %p2249_p6 }
  0x57   : > { %p2257_p1 = pnand %p2256_p3, %p2250_p8 }
  0x59   : > { %2260 = shalt.err (!%p2257_p1)
}
  0x5a   : > { %2031 = dma.hbm_to_vmem [thread:$0]  (!%p2556_p5), %s3114_s2, 1024, %s291_s24, [#allocation9], %s2444_s26, %s2444_s26, %s2445_s27  }
  0x5b   : > { %s2446_s8 = smov [#allocation13]   ;;  %s2447_s15 = smov [#allocation14]  }
  0x5c   : > { %s319_s9 = sshll.u32 %s2446_s8, 4  ;;  %s335_s28 = sshll.u32 %s2447_s15, 4  ;;  %s320_s9 = int_to_ptr.vmem [resolvable:$true] %s319_s9  ;;  %s336_s28 = int_to_ptr.vmem [resolvable:$true] %s335_s28 }
  0x5d   : > { %s2261_s23 = scalar_lea.hbm %s3117_s5, 1024 }
  0x5e   : > { %p2262_p1 = scmp.ne.s32.totalorder %s3117_s5, %s2261_s23  ;;  %p2268_p12 = scmp.lt.u32.totalorder %s2261_s23, %s3117_s5 }
  0x60   : > { %p2264_p3 = pnand %p2262_p1, %p2572_p7 }
  0x62   : > { %p2265_p11 = pneg %p2264_p3 }
  0x64   : > { %p2270_p13 = pnand %p2268_p12, %p2265_p11 }
  0x66   : > { %2273 = shalt.err (!%p2270_p13)
}
  0x67   : > { %s2274_s24 = scalar_lea.vmem %s320_s9, 1024  ;;  %p2282_p6 = scmp.lt.s32.totalorder %s320_s9, %s320_s9 }
  0x68   : > { %p2275_p0 = scmp.ne.s32.totalorder %s320_s9, %s2274_s24  ;;  %p2283_p8 = scmp.lt.s32.totalorder %s2274_s24, %s2274_s24 }
  0x6a   : > { %p2277_p2 = pnand %p2275_p0, %p2572_p7  ;;  %p2284_p9 = por %p2283_p8, %p2282_p6 }
  0x6c   : > { %p2278_p4 = pneg %p2277_p2 }
  0x6e   : > { %p2285_p10 = pnand %p2284_p9, %p2278_p4 }
  0x70   : > { %2288 = shalt.err (!%p2285_p10)
}
  0x71   : > { %2037 = dma.hbm_to_vmem [thread:$0]  (!%p2556_p5), %s3117_s5, 1024, %s320_s9, [#allocation12], %s2444_s26, %s2444_s26, %s2445_s27  }
  0x72   : > { %s2289_s29 = scalar_lea.hbm %s3119_s7, 1024 }
  0x73   : > { %p2290_p1 = scmp.ne.s32.totalorder %s3119_s7, %s2289_s29  ;;  %p2296_p12 = scmp.lt.u32.totalorder %s2289_s29, %s3119_s7 }
  0x75   : > { %p2292_p3 = pnand %p2290_p1, %p2572_p7 }
  0x77   : > { %p2293_p11 = pneg %p2292_p3 }
  0x79   : > { %p2298_p13 = pnand %p2296_p12, %p2293_p11 }
  0x7b   : > { %2301 = shalt.err (!%p2298_p13)
}
  0x7c   : > { %s2302_s22 = scalar_lea.vmem %s336_s28, 1024  ;;  %p2310_p6 = scmp.lt.s32.totalorder %s336_s28, %s336_s28 }
  0x7d   : > { %p2303_p0 = scmp.ne.s32.totalorder %s336_s28, %s2302_s22  ;;  %p2311_p8 = scmp.lt.s32.totalorder %s2302_s22, %s2302_s22 }
  0x7f   : > { %p2305_p2 = pnand %p2303_p0, %p2572_p7  ;;  %p2312_p9 = por %p2311_p8, %p2310_p6 }
  0x81   : > { %p2306_p4 = pneg %p2305_p2 }
  0x83   : > { %p2313_p10 = pnand %p2312_p9, %p2306_p4 }
  0x85   : > { %2316 = shalt.err (!%p2313_p10)
}
  0x86   : > { %2040 = dma.hbm_to_vmem [thread:$0]  (!%p2556_p5), %s3119_s7, 1024, %s336_s28, [#allocation15], %s2444_s26, %s2444_s26, %s2445_s27  }
  0x87   : > { %s35_s20 = sadd.s32 1, %s2435_s13  ;;  %s47_s18 = sadd.s32 1, %s2427_s11 }
  0x88   : > { %p36_p7 = scmp.ge.s32.totalorder %s35_s20, 2  ;;  %p54_p1 = scmp.ne.s32.totalorder %s2427_s11, %s2423_s10 }
  0x89   : > { %p55_p3 = scmp.eq.s32.totalorder %s2439_s14, 0  ;;  %p60_p12 = scmp.ne.s32.totalorder %s2423_s10, %s2419_s30 }
  0x8a   : > { %s3153_s20 = smov (%p36_p7, %s35_s20), 0  ;;  %p2050_p13 = scmp.lt.s32.totalorder %s2439_s14, 2 }
  0x8b   : > { %p2693_p11 = por %p55_p3, %p54_p1  ;;  %s42_s6 = ssub.s32 %s2435_s13, %s3153_s20 }
  0x8c   : > { %p45_p0 = scmp.eq.s32.totalorder %s42_s6, 0  ;;  %p3137_p2 = scmp.ne.s32.totalorder %s3131_s16, 0 }
  0x8d   : > { %s352_s27 = sand.u32 1, %s2427_s11   ;;  %s1591_s28 = sshll.u32 %s2435_s13, 9 }
  0x8e   : > { %p2704_p4 = por %p3137_p2, %p60_p12  ;;  %s1532_s15 = sshll.u32 %s352_s27, 5 }
  0x8f   : > { %s2711_s8 = scalar_select %p45_p0, %s2427_s11, %s47_s18  }
  0x90   : > { %s2716_s23 = scalar_lea.hbm %s3112_s0, %s1591_s28  ;;  %s356_s30 = scalar_lea.vmem [#allocation5], %s1532_s15 }
  0x91   : > { %s364_s25 = sshll.u32 %s356_s30, 4  ;;  %p2720_p5 = pnand %p2050_p13, %p2693_p11  ;;  %s2724_s25 = int_to_ptr.vmem [resolvable:$true] %s364_s25 }
  0x92   : > { %s2726_s22 = scalar_lea.sflag [#allocation6], %s352_s27  ;;  %s2317_s9 = scalar_lea.hbm %s2716_s23, 512 }
  0x93   : > { %p2318_p6 = scmp.ne.s32.totalorder %s2716_s23, %s2317_s9  ;;  %p2319_p8 = pneg %p2720_p5 }
  0x94   : > { %s2322_s1 = scalar_lea.hbm %s3112_s0, 1024  ;;  %p2323_p7 = scmp.lt.u32.totalorder %s2716_s23, %s3112_s0 }
  0x95   : > { %p2320_p9 = pnand %p2319_p8, %p2318_p6  ;;  %p2324_p1 = scmp.lt.u32.totalorder %s2322_s1, %s2317_s9 }
  0x96   : > { %p2326_p11 = scmp.lt.u32.totalorder %s2317_s9, %s2716_s23 }
  0x97   : > { %p2321_p10 = pneg %p2320_p9  ;;  %p2325_p3 = por %p2324_p1, %p2323_p7 }
  0x99   : > { %p2327_p12 = por %p2326_p11, %p2325_p3 }
  0x9b   : > { %p2328_p13 = pnand %p2327_p12, %p2321_p10 }
  0x9d   : > { %2331 = shalt.err (!%p2328_p13)
}
  0x9e   : > { %s2332_s27 = scalar_lea.vmem %s2724_s25, 512  ;;  %s2448_s15 = smov [#allocation5]  }
  0x9f   : > { %p2333_p0 = scmp.ne.s32.totalorder %s2724_s25, %s2332_s27  ;;  %s2337_s29 = sshll.u32 %s2448_s15, 4  ;;  %s2338_s29 = int_to_ptr.vmem [resolvable:$false] %s2337_s29 }
  0xa0   : > { %s2339_s21 = scalar_lea.vmem %s2338_s29, 1024  ;;  %p2340_p9 = scmp.lt.s32.totalorder %s2724_s25, %s2338_s29 }
  0xa1   : > { %p2335_p2 = pnand %p2333_p0, %p2319_p8  ;;  %p2341_p7 = scmp.lt.s32.totalorder %s2339_s21, %s2332_s27 }
  0xa3   : > { %p2336_p6 = pneg %p2335_p2  ;;  %p2342_p1 = por %p2341_p7, %p2340_p9 }
  0xa5   : > { %p2343_p3 = pnand %p2342_p1, %p2336_p6 }
  0xa7   : > { %2346 = shalt.err (!%p2343_p3)
}
  0xa8   : > { %s2449_s30 = smov 128   ;;  %s2450_s9 = smov 8  }
  0xa9   : > { %2044 = dma.hbm_to_vmem [thread:$0]  (!%p2720_p5), %s2716_s23, 512, %s2724_s25, %s2726_s22, %s2449_s30, %s2449_s30, %s2450_s9  }
  0xaa   : > { %p3140_p8 = scmp.ne.s32.totalorder %s3132_s17, 0 }
  0xab   : > { %s378_s24 = sand.u32 (!%p3140_p8), 1, %s2423_s10  }
  0xac   : > { %376 = sbr.rel (%p3140_p8) target bundleno = 1657 (0x679), region = 56  ;;  %s1536_s18 = sshll.u32 (!%p3140_p8), %s378_s24, 5 }
  0xad   : > { %s379_s1 = scalar_lea.sflag (!%p3140_p8), [#allocation6], %s378_s24  ;;  %s2757_s6 = scalar_lea.vmem (!%p3140_p8), [#allocation5], %s1536_s18 }
  0xb3   : > { %2398 = dma.done.wait (%p2704_p4), %s379_s1, 512  }
  0xb4   : > { %2400 = vsyncadd (%p2704_p4), %s379_s1, 4294966784  ;;  %p3141_p10 = scmp.ne.s32.totalorder %s3131_s16, 0 }
  0xb6   : > { %2402 = dma.done.wait (%p3141_p10), [#allocation9], 2048  }
  0xb7   : > { %2404 = vsyncadd (%p3141_p10), [#allocation9], 4294965248 }
  0xb8   : > { %2406 = dma.done.wait (%p3141_p10), [#allocation12], 2048  }
  0xb9   : > { %2408 = vsyncadd (%p3141_p10), [#allocation12], 4294965248 }
  0xba   : > { %2410 = dma.done.wait (%p3141_p10), [#allocation15], 1024  }
  0xbb   : > { %2412 = vsyncadd (%p3141_p10), [#allocation15], 4294966272  ;;  %p1542_p4 = scmp.ne.s32.totalorder %s2431_s12, 0 }
  0xbc   : > { %v2451_v0 = vmov (!%p1542_p4), 0.0  }
  0xbd   : > { %437 = sbr.rel (%p1542_p4) target bundleno = 196 (0xc4), region = 84  ;;  %438 = vst [vmem:[#allocation3] sm:$0xff] (!%p1542_p4), %v2451_v0  ;;  %439 = vst [vmem:[#allocation4] sm:$0xff] (!%p1542_p4), %v2451_v0 }
  0xc4 PF: > { %v2121_v1 = vld [vmem:[#allocation8] sm:$0xff]   ;;  %v2452_v2 = vmov 0.0   ;;  %v2123_v4 = vld [vmem:[#allocation8 + $0x8] sm:$0xff]   ;;  %vm2453_vm0 = vmmov 0   ;;  %v2125_v6 = vld [vmem:[#allocation8 + $0x10] sm:$0xff]   ;;  %s3142_s25 = sld [smem:[#allocation23_spill]] }
  0xc5   : > { %1739 = vmatprep.subr.bf16.mxu1 %v2452_v2  ;;  %v2777_v3 = vld [vmem:[#allocation10] sm:$0xff]   ;;  %1719 = vmatprep.subr.bf16.mxu0 %v2121_v1  ;;  %v2782_v5 = vld [vmem:[#allocation10 + $0x8] sm:$0xff]   ;;  %v2786_v7 = vld [vmem:[#allocation10 + $0x10] sm:$0xff]   ;;  %p1577_p5 = scmp.ne.s32.totalorder %s2431_s12, 1 }
  0xc6   : > { %1755 = vmatprep.mubr.msk.bf16.mxu1 %vm2453_vm0, %v2452_v2  ;;  %1720 = vmatpush3.bf16.msra.mxu0 %v2121_v1  ;;  %v2127_v8 = vld [vmem:[#allocation8 + $0x18] sm:$0xff]   ;;  %v2129_v10 = vld [vmem:[#allocation8 + $0x20] sm:$0xff]   ;;  %v2131_v12 = vld [vmem:[#allocation8 + $0x28] sm:$0xff]   ;;  %vm2455_vm1 = vmmov (!%p1577_p5), 0   ;;  %s3143_s22 = sld [smem:[#allocation24_spill]] (!%p1577_p5) }
  0xc7   : > { %1740 = vmatpush3.bf16.msra.mxu1 %v2777_v3  ;;  %1721 = vmatprep.subr.bf16.mxu0 %v2123_v4  ;;  %v2790_v9 = vld [vmem:[#allocation10 + $0x18] sm:$0xff]   ;;  %v2794_v11 = vld [vmem:[#allocation10 + $0x20] sm:$0xff]   ;;  %v441_v14 = vld [vmem:[%s2757_s6 + $0x8] sm:$0xff] }
  0xc8   : > { %1741 = vmatprep.subr.bf16.mxu1 %v2452_v2  ;;  %v440_v13 = vld [vmem:[%s2757_s6] sm:$0xff]  ;;  %v2800_v16 = vld [vmem:[#allocation10 + $0x28] sm:$0xff]   ;;  %v2133_v17 = vld [vmem:[#allocation8 + $0x30] sm:$0xff]  }
  0xc9   : > { %v444_v15 = vpack.c.bf16 %v441_v14, %v440_v13  ;;  %v2804_v18 = vld [vmem:[#allocation10 + $0x30] sm:$0xff]   ;;  %v2135_v19 = vld [vmem:[#allocation8 + $0x38] sm:$0xff]   ;;  %v2813_v24 = vld [vmem:[#allocation13] sm:$0xff]  }
  0xca   : > { %1722 = vmatpush3.bf16.msra.mxu0 %v2123_v4  ;;  %v2807_v20 = vld [vmem:[#allocation10 + $0x38] sm:$0xff]   ;;  %v442_v21 = vld [vmem:[%s2757_s6 + $0x10] sm:$0xff]  ;;  %v2818_v27 = vld [vmem:[#allocation11] sm:$0xff]  }
  0xcb   : > { %1742 = vmatpush3.bf16.msra.mxu1 %v2782_v5  ;;  %1723 = vmatprep.subr.bf16.mxu0 %v2125_v6  ;;  %v443_v22 = vld [vmem:[%s2757_s6 + $0x18] sm:$0xff]  ;;  %v619_v23 = vld [vmem:[#allocation3] sm:$0xff]  ;;  %v2821_v28 = vld [vmem:[#allocation13 + $0x8] sm:$0xff]  }
  0xcc   : > { %1743 = vmatprep.subr.bf16.mxu1 %v2452_v2  ;;  %1735 = vmatprep.mubr.bf16.mxu0 %v444_v15  ;;  %v445_v25 = vpack.c.bf16 %v443_v22, %v442_v21  ;;  %v620_v26 = vpack.c.bf16 %v619_v23, %v619_v23  ;;  %v2827_v29 = vld [vmem:[#allocation11 + $0x8] sm:$0xff]   ;;  %v2833_v30 = vld [vmem:[#allocation13 + $0x10] sm:$0xff]   ;;  %v2841_v32 = vld [vmem:[#allocation13 + $0x18] sm:$0xff]  }
  0xcd   : > { %v2837_v31 = vld [vmem:[#allocation11 + $0x10] sm:$0xff]   ;;  %v2847_v33 = vld [vmem:[#allocation13 + $0x20] sm:$0xff]   ;;  %v2851_v34 = vld [vmem:[#allocation13 + $0x28] sm:$0xff]  }
  0xce   : > { %1724 = vmatpush3.bf16.msra.mxu0 %v2125_v6  ;;  %v2855_v35 = vld [vmem:[#allocation13 + $0x30] sm:$0xff]   ;;  %v2859_v36 = vld [vmem:[#allocation13 + $0x38] sm:$0xff]   ;;  %v2886_v40 = vld [vmem:[#allocation11 + $0x20] sm:$0xff]  }
  0xcf   : > { %1744 = vmatpush3.bf16.msra.mxu1 %v2786_v7  ;;  %1725 = vmatprep.subr.bf16.mxu0 %v2127_v8  ;;  %v621_v37 = vld [vmem:[#allocation4] sm:$0xff]  ;;  %v2890_v41 = vld [vmem:[#allocation11 + $0x28] sm:$0xff]   ;;  %v2894_v42 = vld [vmem:[#allocation11 + $0x30] sm:$0xff]  }
  0xd0   : > { %1745 = vmatprep.subr.bf16.mxu1 %v2452_v2  ;;  %v622_v38 = vpack.c.bf16 %v621_v37, %v621_v37  ;;  %v2882_v39 = vld [vmem:[#allocation11 + $0x18] sm:$0xff]   ;;  %v1543_v44 = vld [vmem:[%s3115_s3] ss:$0 sm:$0xff] }
  0xd1   : > { %v2898_v43 = vld [vmem:[#allocation11 + $0x38] sm:$0xff]   ;;  %v2948_v0 = vld [vmem:[%s3142_s25] ss:$0 sm:$0xff] }
  0xd2   : > { %1726 = vmatpush3.bf16.msra.mxu0 %v2127_v8 }
  0xd3   : > { %1746 = vmatpush3.bf16.msra.mxu1 %v2790_v9  ;;  %1727 = vmatprep.subr.bf16.mxu0 %v2129_v10 }
  0xd4   : > { %1747 = vmatprep.subr.bf16.mxu1 %v2452_v2 }
  0xd6   : > { %1728 = vmatpush3.bf16.msra.mxu0 %v2129_v10 }
  0xd7   : > { %1748 = vmatpush3.bf16.msra.mxu1 %v2794_v11  ;;  %1729 = vmatprep.subr.bf16.mxu0 %v2131_v12 }
  0xd8   : > { %1749 = vmatprep.subr.bf16.mxu1 %v2452_v2 }
  0xda   : > { %1730 = vmatpush3.bf16.msra.mxu0 %v2131_v12 }
  0xdb   : > { %1750 = vmatpush3.bf16.msra.mxu1 %v2800_v16  ;;  %1731 = vmatprep.subr.bf16.mxu0 %v2133_v17 }
  0xdc   : > { %1751 = vmatprep.subr.bf16.mxu1 %v2452_v2 }
  0xde   : > { %1732 = vmatpush3.bf16.msra.mxu0 %v2133_v17 }
  0xdf   : > { %1752 = vmatpush3.bf16.msra.mxu1 %v2804_v18  ;;  %1733 = vmatprep.subr.bf16.mxu0 %v2135_v19 }
  0xe0   : > { %1753 = vmatprep.subr.bf16.mxu1 %v2452_v2 }
  0xe2   : > { %1734 = vmatpush3.bf16.msra.mxu0 %v2135_v19 }
  0xe3   : > { %1754 = vmatpush3.bf16.msra.mxu1 %v2807_v20  ;;  %1759 = vmatprep.subr.bf16.mxu0 %v2452_v2 }
  0xe4   : > { %1779 = vmatprep.subr.bf16.mxu1 %v2452_v2 }
  0xe5   : > { %1736 = vmatmul.mubr.bf16.vlgmr.msra.gmra.mrb[0].mxu0 %v445_v25 }
  0xe6   : > { %1756 = vmatmul.mubr.bf16.vlgmr.msra.gmra.mrb[0].mxu1 %v620_v26  ;;  %1760 = vmatpush3.bf16.msra.mxu0 %v2813_v24 }
  0xe7   : > { %1775 = vmatprep.mubr.msk.bf16.mxu0 %vm2453_vm0, %v2452_v2  ;;  %1761 = vmatprep.subr.bf16.mxu0 %v2452_v2 }
  0xe8   : > { %1780 = vmatpush3.bf16.msra.mxu1 %v2818_v27  ;;  %1795 = vmatprep.mubr.msk.bf16.mxu1 %vm2453_vm0, %v2452_v2 }
  0xe9   : > { %1781 = vmatprep.subr.bf16.mxu1 %v2452_v2 }
  0xea   : > { %1762 = vmatpush3.bf16.msra.mxu0 %v2821_v28 }
  0xeb   : > { %1763 = vmatprep.subr.bf16.mxu0 %v2452_v2 }
  0xec   : > { %1782 = vmatpush3.bf16.msra.mxu1 %v2827_v29 }
  0xed   : > { %1783 = vmatprep.subr.bf16.mxu1 %v2452_v2 }
  0xee   : > { %1764 = vmatpush3.bf16.msra.mxu0 %v2833_v30 }
  0xef   : > { %1765 = vmatprep.subr.bf16.mxu0 %v2452_v2 }
  0xf0   : > { %1784 = vmatpush3.bf16.msra.mxu1 %v2837_v31 }
  0xf1   : > { %1785 = vmatprep.subr.bf16.mxu1 %v2452_v2 }
  0xf2   : > { %1766 = vmatpush3.bf16.msra.mxu0 %v2841_v32 }
  0xf3   : > { %1767 = vmatprep.subr.bf16.mxu0 %v2452_v2 }
  0xf4   : > { %1786 = vmatpush3.bf16.msra.mxu1 %v2882_v39 }
  0xf5   : > { %1787 = vmatprep.subr.bf16.mxu1 %v2452_v2 }
  0xf6   : > { %1768 = vmatpush3.bf16.msra.mxu0 %v2847_v33 }
  0xf7   : > { %1769 = vmatprep.subr.bf16.mxu0 %v2452_v2 }
  0xf8   : > { %1788 = vmatpush3.bf16.msra.mxu1 %v2886_v40 }
  0xf9   : > { %1789 = vmatprep.subr.bf16.mxu1 %v2452_v2 }
  0xfa   : > { %1770 = vmatpush3.bf16.msra.mxu0 %v2851_v34 }
  0xfb   : > { %1771 = vmatprep.subr.bf16.mxu0 %v2452_v2 }
  0xfc   : > { %1790 = vmatpush3.bf16.msra.mxu1 %v2890_v41 }
  0xfd   : > { %1791 = vmatprep.subr.bf16.mxu1 %v2452_v2 }
  0xfe   : > { %1772 = vmatpush3.bf16.msra.mxu0 %v2855_v35 }
  0xff   : > { %1773 = vmatprep.subr.bf16.mxu0 %v2452_v2 }
 0x100   : > { %1792 = vmatpush3.bf16.msra.mxu1 %v2894_v42 }
 0x101   : > { %1793 = vmatprep.subr.bf16.mxu1 %v2452_v2 }
 0x102   : > { %1774 = vmatpush3.bf16.msra.mxu0 %v2859_v36 }
 0x103   : > { %1799 = vmatprep.subr.bf16.mxu0 %v2452_v2 }
 0x104   : > { %1794 = vmatpush3.bf16.msra.mxu1 %v2898_v43 }
 0x105   : > { %1776 = vmatmul.mubr.bf16.vlgmr.msra.gmra.mrb[4].mxu0 %v622_v38  ;;  %1819 = vmatprep.subr.bf16.mxu1 %v2452_v2 }
 0x106   : > { %1800 = vmatpush3.bf16.msra.mxu0 %v2777_v3  ;;  %1815 = vmatprep.mubr.msk.bf16.mxu0 %vm2453_vm0, %v2452_v2 }
 0x107   : > { %1801 = vmatprep.subr.bf16.mxu0 %v2452_v2 }
 0x10a   : > { %1802 = vmatpush3.bf16.msra.mxu0 %v2782_v5 }
 0x10b   : > { %1803 = vmatprep.subr.bf16.mxu0 %v2452_v2 }
 0x10e   : > { %1804 = vmatpush3.bf16.msra.mxu0 %v2786_v7 }
 0x10f   : > { %1805 = vmatprep.subr.bf16.mxu0 %v2452_v2 }
 0x112   : > { %1806 = vmatpush3.bf16.msra.mxu0 %v2790_v9 }
 0x113   : > { %1807 = vmatprep.subr.bf16.mxu0 %v2452_v2 }
 0x116   : > { %1808 = vmatpush3.bf16.msra.mxu0 %v2794_v11 }
 0x117   : > { %1809 = vmatprep.subr.bf16.mxu0 %v2452_v2 }
 0x11a   : > { %1810 = vmatpush3.bf16.msra.mxu0 %v2800_v16 }
 0x11b   : > { %1811 = vmatprep.subr.bf16.mxu0 %v2452_v2 }
 0x11e   : > { %1812 = vmatpush3.bf16.msra.mxu0 %v2804_v18 }
 0x11f   : > { %1813 = vmatprep.subr.bf16.mxu0 %v2452_v2 }
 0x122   : > { %1814 = vmatpush3.bf16.msra.mxu0 %v2807_v20 }
 0x123   : > { %1839 = vmatprep.subr.bf16.mxu0 %v2452_v2 }
 0x1b8   : > { %v1737_v45 = vpop.f32.mrb[0].mxu0 }
 0x1b9   : > { %v706_v46 = vpop.f32.mrb[0].mxu1  ;;  %v2905_v47 = vadd.f32 %v1737_v45, %v1543_v44  ;;  %v551_v48 = vpop.f32.mrb[1].mxu0 }
 0x1ba   : > { %v1757_v49 = vpop.f32.mrb[1].mxu1  ;;  %v552_v50 = vadd.f32 %v1543_v44, %v551_v48  ;;  %v1738_v51 = vpop.f32.mrb[2].mxu0 }
 0x1bb   : > { %v709_v52 = vpop.f32.mrb[2].mxu1  ;;  %v2907_v53 = vadd.f32 %v1738_v51, %v1543_v44  ;;  %v554_v54 = vpop.f32.mrb[3].mxu0 }
 0x1bc   : > { %v1758_v55 = vpop.f32.mrb[3].mxu1  ;;  %v712_v56 = vadd.f32 %v706_v46, %v552_v50  ;;  %v555_v57 = vadd.f32 %v1543_v44, %v554_v54 }
 0x1be   : > { %2153 = vtanh.f32 %v712_v56 }
 0x1c8   : > { %v2154_v58 = vpop.eup %2153 }
 0x1c9   : > { %v714_v59 = vpack.c.bf16 %v2154_v58, %v2154_v58 }
 0x1cb   : > { %1796 = vmatmul.mubr.bf16.vlgmr.msra.gmra.mrb[4].mxu1 %v714_v59  ;;  %1816 = vmatmul.mubr.bf16.vlgmr.msra.gmra.mrb[8].mxu0 %v714_v59 }
 0x1cc   : > { %1840 = vmatpush3.bf16.msra.mxu0 %v2818_v27  ;;  %1820 = vmatpush3.bf16.msra.mxu1 %v2813_v24 }
 0x1cd   : > { %1841 = vmatprep.subr.bf16.mxu0 %v2452_v2  ;;  %1821 = vmatprep.subr.bf16.mxu1 %v2452_v2 }
 0x1ce   : > { %1855 = vmatprep.mubr.msk.bf16.mxu0 %vm2453_vm0, %v2452_v2  ;;  %1835 = vmatprep.mubr.msk.bf16.mxu1 %vm2453_vm0, %v2452_v2 }
 0x1d0   : > { %1842 = vmatpush3.bf16.msra.mxu0 %v2827_v29  ;;  %1822 = vmatpush3.bf16.msra.mxu1 %v2821_v28 }
 0x1d1   : > { %1843 = vmatprep.subr.bf16.mxu0 %v2452_v2  ;;  %1823 = vmatprep.subr.bf16.mxu1 %v2452_v2 }
 0x1d4   : > { %1844 = vmatpush3.bf16.msra.mxu0 %v2837_v31  ;;  %1824 = vmatpush3.bf16.msra.mxu1 %v2833_v30 }
 0x1d5   : > { %1845 = vmatprep.subr.bf16.mxu0 %v2452_v2  ;;  %1825 = vmatprep.subr.bf16.mxu1 %v2452_v2 }
 0x1d8   : > { %v797_v60 = vpop.f32.mrb[4].mxu0  ;;  %1846 = vmatpush3.bf16.msra.mxu0 %v2882_v39  ;;  %1826 = vmatpush3.bf16.msra.mxu1 %v2841_v32 }
 0x1d9   : > { %v1777_v61 = vpop.f32.mrb[5].mxu0  ;;  %1847 = vmatprep.subr.bf16.mxu0 %v2452_v2  ;;  %1827 = vmatprep.subr.bf16.mxu1 %v2452_v2 }
 0x1da   : > { %v800_v62 = vpop.f32.mrb[6].mxu0 }
 0x1db   : > { %v1778_v63 = vpop.f32.mrb[7].mxu0 }
 0x1dc   : > { %1848 = vmatpush3.bf16.msra.mxu0 %v2886_v40  ;;  %1828 = vmatpush3.bf16.msra.mxu1 %v2847_v33 }
 0x1dd   : > { %1849 = vmatprep.subr.bf16.mxu0 %v2452_v2  ;;  %1829 = vmatprep.subr.bf16.mxu1 %v2452_v2 }
 0x1e0   : > { %1850 = vmatpush3.bf16.msra.mxu0 %v2890_v41  ;;  %1830 = vmatpush3.bf16.msra.mxu1 %v2851_v34 }
 0x1e1   : > { %1851 = vmatprep.subr.bf16.mxu0 %v2452_v2  ;;  %1831 = vmatprep.subr.bf16.mxu1 %v2452_v2 }
 0x1e4   : > { %1852 = vmatpush3.bf16.msra.mxu0 %v2894_v42  ;;  %1832 = vmatpush3.bf16.msra.mxu1 %v2855_v35 }
 0x1e5   : > { %1853 = vmatprep.subr.bf16.mxu0 %v2452_v2  ;;  %1833 = vmatprep.subr.bf16.mxu1 %v2452_v2 }
 0x1e8   : > { %1854 = vmatpush3.bf16.msra.mxu0 %v2898_v43  ;;  %1834 = vmatpush3.bf16.msra.mxu1 %v2859_v36 }
 0x1e9   : > { %1859 = vmatprep.subr.bf16.mxu1 %v2452_v2  ;;  %1879 = vmatprep.subr.bf16.mxu0 %v2452_v2 }
 0x29e   : > { %v885_v1 = vpop.f32.mrb[4].mxu1  ;;  %v936_v4 = vpop.f32.mrb[8].mxu0 }
 0x29f   : > { %v886_v6 = vadd.f32 %v885_v1, %v797_v60  ;;  %v942_v8 = vadd.f32 %v936_v4, %v555_v57  ;;  %v1797_v10 = vpop.f32.mrb[5].mxu1  ;;  %v1817_v12 = vpop.f32.mrb[9].mxu0 }
 0x2a0   : > { %v888_v13 = vpop.f32.mrb[6].mxu1  ;;  %v939_v14 = vpop.f32.mrb[10].mxu0  ;;  %v2169_v10 = vld [vmem:[#allocation14] sm:$0xff] (!%p1577_p5)   ;;  %v2454_v12 = vmov (!%p1577_p5), 0.0  }
 0x2a1   : > { %v897_v15 = vadd.f32 %v2948_v0, %v886_v6  ;;  %2155 = vtanh.f32 %v942_v8  ;;  %v1798_v17 = vpop.f32.mrb[7].mxu1  ;;  %v1818_v19 = vpop.f32.mrb[11].mxu0  ;;  %v2170_v13 = vld [vmem:[#allocation14 + $0x8] sm:$0xff] (!%p1577_p5)   ;;  %v2171_v14 = vld [vmem:[#allocation14 + $0x10] sm:$0xff] (!%p1577_p5)  }
 0x2a2   : > { %v2174_v17 = vld [vmem:[#allocation14 + $0x28] sm:$0xff] (!%p1577_p5)   ;;  %v2175_v19 = vld [vmem:[#allocation14 + $0x30] sm:$0xff] (!%p1577_p5)  }
 0x2a3   : > { %2157 = vtanh.f32 %v897_v15  ;;  %v2173_v15 = vld [vmem:[#allocation14 + $0x20] sm:$0xff] (!%p1577_p5)  }
 0x2ab   : > { %v2156_v21 = vpop.eup %2155 }
 0x2ac   : > { %v944_v22 = vpack.c.bf16 %v2156_v21, %v2156_v21  ;;  %v2176_v21 = vld [vmem:[#allocation14 + $0x38] sm:$0xff] (!%p1577_p5)  }
 0x2ad   : > { %v2158_v23 = vpop.eup %2157 }
 0x2ae   : > { %v899_v25 = vpack.c.bf16 %v2158_v23, %v2158_v23  ;;  %1856 = vmatmul.mubr.bf16.vlgmr.msra.gmra.mrb[12].mxu0 %v944_v22 }
 0x2af   : > { %1880 = vmatpush3.bf16.msra.mxu0 %v2813_v24  ;;  %1895 = vmatprep.mubr.msk.bf16.mxu0 %vm2453_vm0, %v2452_v2 }
 0x2b0   : > { %1836 = vmatmul.mubr.bf16.vlgmr.msra.gmra.mrb[8].mxu1 %v899_v25  ;;  %1881 = vmatprep.subr.bf16.mxu0 %v2452_v2 }
 0x2b1   : > { %1860 = vmatpush3.bf16.msra.mxu1 %v2777_v3  ;;  %1875 = vmatprep.mubr.msk.bf16.mxu1 %vm2453_vm0, %v2452_v2 }
 0x2b2   : > { %1861 = vmatprep.subr.bf16.mxu1 %v2452_v2 }
 0x2b3   : > { %1882 = vmatpush3.bf16.msra.mxu0 %v2821_v28 }
 0x2b4   : > { %1883 = vmatprep.subr.bf16.mxu0 %v2452_v2 }
 0x2b5   : > { %1862 = vmatpush3.bf16.msra.mxu1 %v2782_v5 }
 0x2b6   : > { %1863 = vmatprep.subr.bf16.mxu1 %v2452_v2 }
 0x2b7   : > { %1884 = vmatpush3.bf16.msra.mxu0 %v2833_v30 }
 0x2b8   : > { %1885 = vmatprep.subr.bf16.mxu0 %v2452_v2 }
 0x2b9   : > { %1864 = vmatpush3.bf16.msra.mxu1 %v2786_v7 }
 0x2ba   : > { %1865 = vmatprep.subr.bf16.mxu1 %v2452_v2 }
 0x2bb   : > { %1886 = vmatpush3.bf16.msra.mxu0 %v2841_v32 }
 0x2bc   : > { %1887 = vmatprep.subr.bf16.mxu0 %v2452_v2 }
 0x2bd   : > { %1866 = vmatpush3.bf16.msra.mxu1 %v2790_v9 }
 0x2be   : > { %1867 = vmatprep.subr.bf16.mxu1 %v2452_v2 }
 0x2bf   : > { %1888 = vmatpush3.bf16.msra.mxu0 %v2847_v33 }
 0x2c0   : > { %1889 = vmatprep.subr.bf16.mxu0 %v2452_v2 }
 0x2c1   : > { %1868 = vmatpush3.bf16.msra.mxu1 %v2794_v11 }
 0x2c2   : > { %1869 = vmatprep.subr.bf16.mxu1 %v2452_v2 }
 0x2c3   : > { %1890 = vmatpush3.bf16.msra.mxu0 %v2851_v34 }
 0x2c4   : > { %1891 = vmatprep.subr.bf16.mxu0 %v2452_v2 }
 0x2c5   : > { %1870 = vmatpush3.bf16.msra.mxu1 %v2800_v16 }
 0x2c6   : > { %1871 = vmatprep.subr.bf16.mxu1 %v2452_v2 }
 0x2c7   : > { %1892 = vmatpush3.bf16.msra.mxu0 %v2855_v35 }
 0x2c8   : > { %1893 = vmatprep.subr.bf16.mxu0 %v2452_v2 }
 0x2c9   : > { %1872 = vmatpush3.bf16.msra.mxu1 %v2804_v18 }
 0x2ca   : > { %1873 = vmatprep.subr.bf16.mxu1 %v2452_v2 }
 0x2cb   : > { %1894 = vmatpush3.bf16.msra.mxu0 %v2859_v36 }
 0x2cc   : > { %1919 = vmatprep.subr.bf16.mxu0 %v2452_v2 }
 0x2cd   : > { %1874 = vmatpush3.bf16.msra.mxu1 %v2807_v20 }
 0x2ce   : > { %1899 = vmatprep.subr.bf16.mxu1 %v2452_v2 }
 0x2d0   : > { %1876 = vmatmul.mubr.bf16.vlgmr.msra.gmra.mrb[12].mxu1 %v944_v22  ;;  %v1578_v22 = vld [vmem:[%s3143_s22] ss:$0 sm:$0xff] (!%p1577_p5) }
 0x2d1   : > { %1900 = vmatpush3.bf16.msra.mxu1 %v2818_v27  ;;  %1915 = vmatprep.mubr.msk.bf16.mxu1 %vm2453_vm0, %v2452_v2 }
 0x2d2   : > { %1901 = vmatprep.subr.bf16.mxu1 %v2452_v2 }
 0x2d5   : > { %1902 = vmatpush3.bf16.msra.mxu1 %v2827_v29 }
 0x2d6   : > { %1903 = vmatprep.subr.bf16.mxu1 %v2452_v2 }
 0x2d9   : > { %1904 = vmatpush3.bf16.msra.mxu1 %v2837_v31 }
 0x2da   : > { %1905 = vmatprep.subr.bf16.mxu1 %v2452_v2 }
 0x2dd   : > { %1906 = vmatpush3.bf16.msra.mxu1 %v2882_v39 }
 0x2de   : > { %1907 = vmatprep.subr.bf16.mxu1 %v2452_v2 }
 0x2e1   : > { %1908 = vmatpush3.bf16.msra.mxu1 %v2886_v40 }
 0x2e2   : > { %1909 = vmatprep.subr.bf16.mxu1 %v2452_v2 }
 0x2e5   : > { %1910 = vmatpush3.bf16.msra.mxu1 %v2890_v41 }
 0x2e6   : > { %1911 = vmatprep.subr.bf16.mxu1 %v2452_v2 }
 0x2e9   : > { %1912 = vmatpush3.bf16.msra.mxu1 %v2894_v42 }
 0x2ea   : > { %1913 = vmatprep.subr.bf16.mxu1 %v2452_v2 }
 0x2ed   : > { %1914 = vmatpush3.bf16.msra.mxu1 %v2898_v43 }
 0x2ee   : > { %1939 = vmatprep.subr.bf16.mxu1 %v2452_v2 }
 0x381   : > { %v1019_v26 = vpop.f32.mrb[12].mxu0 }
 0x382   : > { %v1857_v37 = vpop.f32.mrb[13].mxu0 }
 0x383   : > { %v979_v38 = vpop.f32.mrb[8].mxu1  ;;  %v1022_v44 = vpop.f32.mrb[14].mxu0 }
 0x384   : > { %v1020_v45 = vadd.f32 %v1019_v26, %v979_v38  ;;  %v1837_v46 = vpop.f32.mrb[9].mxu1  ;;  %v1858_v48 = vpop.f32.mrb[15].mxu0 }
 0x385   : > { %v982_v49 = vpop.f32.mrb[10].mxu1 }
 0x386   : > { %v1025_v50 = vadd.f32 %v2948_v0, %v1020_v45  ;;  %v1838_v51 = vpop.f32.mrb[11].mxu1 }
 0x388   : > { %2159 = vtanh.f32 %v1025_v50 }
 0x392   : > { %v2160_v52 = vpop.eup %2159 }
 0x393   : > { %v1027_v54 = vpack.c.bf16 %v2160_v52, %v2160_v52 }
 0x395   : > { %1896 = vmatmul.mubr.bf16.vlgmr.msra.gmra.mrb[16].mxu0 %v1027_v54 }
 0x396   : > { %1920 = vmatpush3.bf16.msra.mxu0 %v2777_v3  ;;  %1935 = vmatprep.mubr.msk.bf16.mxu0 %vm2453_vm0, %v2452_v2 }
 0x397   : > { %1921 = vmatprep.subr.bf16.mxu0 %v2452_v2 }
 0x39a   : > { %1922 = vmatpush3.bf16.msra.mxu0 %v2782_v5 }
 0x39b   : > { %1923 = vmatprep.subr.bf16.mxu0 %v2452_v2 }
 0x39e   : > { %1924 = vmatpush3.bf16.msra.mxu0 %v2786_v7 }
 0x39f   : > { %1925 = vmatprep.subr.bf16.mxu0 %v2452_v2 }
 0x3a2   : > { %1926 = vmatpush3.bf16.msra.mxu0 %v2790_v9 }
 0x3a3   : > { %v1064_v55 = vpop.f32.mrb[12].mxu1  ;;  %1927 = vmatprep.subr.bf16.mxu0 %v2452_v2 }
 0x3a4   : > { %v1070_v3 = vadd.f32 %v1064_v55, %v2905_v47  ;;  %v1877_v56 = vpop.f32.mrb[13].mxu1 }
 0x3a5   : > { %v1067_v57 = vpop.f32.mrb[14].mxu1 }
 0x3a6   : > { %2161 = vtanh.f32 %v1070_v3  ;;  %v1878_v58 = vpop.f32.mrb[15].mxu1  ;;  %1928 = vmatpush3.bf16.msra.mxu0 %v2794_v11 }
 0x3a7   : > { %1929 = vmatprep.subr.bf16.mxu0 %v2452_v2 }
 0x3aa   : > { %1930 = vmatpush3.bf16.msra.mxu0 %v2800_v16 }
 0x3ab   : > { %1931 = vmatprep.subr.bf16.mxu0 %v2452_v2 }
 0x3ae   : > { %1932 = vmatpush3.bf16.msra.mxu0 %v2804_v18 }
 0x3af   : > { %1933 = vmatprep.subr.bf16.mxu0 %v2452_v2 }
 0x3b0   : > { %v2162_v5 = vpop.eup %2161 }
 0x3b1   : > { %v1072_v7 = vpack.c.bf16 %v2162_v5, %v2162_v5 }
 0x3b2   : > { %1934 = vmatpush3.bf16.msra.mxu0 %v2807_v20 }
 0x3b3   : > { %1916 = vmatmul.mubr.bf16.vlgmr.msra.gmra.mrb[16].mxu1 %v1072_v7  ;;  %1959 = vmatprep.subr.bf16.mxu0 %v2452_v2 }
 0x3b4   : > { %1940 = vmatpush3.bf16.msra.mxu1 %v2813_v24  ;;  %1955 = vmatprep.mubr.msk.bf16.mxu1 %vm2453_vm0, %v2452_v2 }
 0x3b5   : > { %1936 = vmatmul.mubr.bf16.vlgmr.msra.gmra.mrb[20].mxu0 %v1072_v7  ;;  %1941 = vmatprep.subr.bf16.mxu1 %v2452_v2 }
 0x3b6   : > { %1960 = vmatpush3.bf16.msra.mxu0 %v2818_v27  ;;  %1975 = vmatprep.mubr.msk.bf16.mxu0 %vm2453_vm0, %v2452_v2 }
 0x3b7   : > { %1961 = vmatprep.subr.bf16.mxu0 %v2452_v2 }
 0x3b8   : > { %1942 = vmatpush3.bf16.msra.mxu1 %v2821_v28 }
 0x3b9   : > { %1943 = vmatprep.subr.bf16.mxu1 %v2452_v2 }
 0x3ba   : > { %1962 = vmatpush3.bf16.msra.mxu0 %v2827_v29 }
 0x3bb   : > { %1963 = vmatprep.subr.bf16.mxu0 %v2452_v2 }
 0x3bc   : > { %1944 = vmatpush3.bf16.msra.mxu1 %v2833_v30 }
 0x3bd   : > { %1945 = vmatprep.subr.bf16.mxu1 %v2452_v2 }
 0x3be   : > { %1964 = vmatpush3.bf16.msra.mxu0 %v2837_v31 }
 0x3bf   : > { %1965 = vmatprep.subr.bf16.mxu0 %v2452_v2 }
 0x3c0   : > { %1946 = vmatpush3.bf16.msra.mxu1 %v2841_v32 }
 0x3c1   : > { %1947 = vmatprep.subr.bf16.mxu1 %v2452_v2 }
 0x3c2   : > { %1966 = vmatpush3.bf16.msra.mxu0 %v2882_v39 }
 0x3c3   : > { %1967 = vmatprep.subr.bf16.mxu0 %v2452_v2 }
 0x3c4   : > { %1948 = vmatpush3.bf16.msra.mxu1 %v2847_v33 }
 0x3c5   : > { %1949 = vmatprep.subr.bf16.mxu1 %v2452_v2 }
 0x3c6   : > { %1968 = vmatpush3.bf16.msra.mxu0 %v2886_v40 }
 0x3c7   : > { %1969 = vmatprep.subr.bf16.mxu0 %v2452_v2 }
 0x3c8   : > { %1950 = vmatpush3.bf16.msra.mxu1 %v2851_v34 }
 0x3c9   : > { %1951 = vmatprep.subr.bf16.mxu1 %v2452_v2 }
 0x3ca   : > { %1970 = vmatpush3.bf16.msra.mxu0 %v2890_v41 }
 0x3cb   : > { %1971 = vmatprep.subr.bf16.mxu0 %v2452_v2 }
 0x3cc   : > { %1952 = vmatpush3.bf16.msra.mxu1 %v2855_v35 }
 0x3cd   : > { %1953 = vmatprep.subr.bf16.mxu1 %v2452_v2 }
 0x3ce   : > { %1972 = vmatpush3.bf16.msra.mxu0 %v2894_v42 }
 0x3cf   : > { %1973 = vmatprep.subr.bf16.mxu0 %v2452_v2 }
 0x3d0   : > { %1954 = vmatpush3.bf16.msra.mxu1 %v2859_v36 }
 0x3d2   : > { %1974 = vmatpush3.bf16.msra.mxu0 %v2898_v43 }
 0x3d3   : > { %1979 = vmatprep.subr.bf16.mxu0 (!%p1577_p5), %v2454_v12 }
 0x468   : > { %v1107_v9 = vpop.f32.mrb[16].mxu0 }
 0x469   : > { %v1897_v11 = vpop.f32.mrb[17].mxu0 }
 0x46a   : > { %v1110_v16 = vpop.f32.mrb[18].mxu0 }
 0x46b   : > { %v1898_v18 = vpop.f32.mrb[19].mxu0 }
 0x486   : > { %v1147_v20 = vpop.f32.mrb[16].mxu1 }
 0x487   : > { %v1148_v24 = vadd.f32 %v1147_v20, %v1107_v9  ;;  %v1917_v27 = vpop.f32.mrb[17].mxu1 }
 0x488   : > { %v1150_v28 = vpop.f32.mrb[18].mxu1  ;;  %v1192_v29 = vpop.f32.mrb[20].mxu0 }
 0x489   : > { %v1153_v30 = vadd.f32 %v2948_v0, %v1148_v24  ;;  %v1198_v31 = vadd.f32 %v1192_v29, %v2907_v53  ;;  %v1918_v32 = vpop.f32.mrb[19].mxu1  ;;  %v1937_v33 = vpop.f32.mrb[21].mxu0 }
 0x48a   : > { %v1195_v2 = vpop.f32.mrb[22].mxu0 }
 0x48b   : > { %2163 = vtanh.f32 %v1153_v30  ;;  %v1938_v34 = vpop.f32.mrb[23].mxu0 }
 0x48c   : > { %2165 = vtanh.f32 %v1198_v31 }
 0x495   : > { %v2164_v35 = vpop.eup %2163 }
 0x496   : > { %v2166_v36 = vpop.eup %2165  ;;  %v1155_v39 = vpack.c.bf16 %v2164_v35, %v2164_v35 }
 0x497   : > { %v1200_v40 = vpack.c.bf16 %v2166_v36, %v2166_v36 }
 0x498   : > { %1956 = vmatmul.mubr.bf16.vlgmr.msra.gmra.mrb[20].mxu1 %v1155_v39 }
 0x499   : > { %v1284_v41 = vunpack.c.l.bf16 %v1200_v40  ;;  %1976 = vmatmul.mubr.bf16.vlgmr.msra.gmra.mrb[24].mxu0 %v1200_v40 }
 0x49a   : > { %1980 = vmatpush3.bf16.msra.mxu0 (!%p1577_p5), %v2169_v10  ;;  %1995 = vmatprep.mubr.msk.bf16.mxu0 (!%p1577_p5), %vm2455_vm1, %v2454_v12 }
 0x49b   : > { %1285 = vst [vmem:[#allocation3] sm:$0xff] %v1284_v41  ;;  %1981 = vmatprep.subr.bf16.mxu0 (!%p1577_p5), %v2454_v12 }
 0x49e   : > { %1982 = vmatpush3.bf16.msra.mxu0 (!%p1577_p5), %v2170_v13 }
 0x49f   : > { %1983 = vmatprep.subr.bf16.mxu0 (!%p1577_p5), %v2454_v12 }
 0x4a2   : > { %1984 = vmatpush3.bf16.msra.mxu0 (!%p1577_p5), %v2171_v14 }
 0x4a3   : > { %1985 = vmatprep.subr.bf16.mxu0 (!%p1577_p5), %v2454_v12 }
 0x56b   : > { %v1235_v42 = vpop.f32.mrb[20].mxu1 }
 0x56c   : > { %v1275_v43 = vpop.f32.mrb[24].mxu0  ;;  %v1957_v47 = vpop.f32.mrb[21].mxu1 }
 0x56d   : > { %v1276_v59 = vadd.f32 %v1275_v43, %v1235_v42  ;;  %v1977_v60 = vpop.f32.mrb[25].mxu0  ;;  %v1238_v53 = vpop.f32.mrb[22].mxu1 }
 0x56e   : > { %v1278_v61 = vpop.f32.mrb[26].mxu0  ;;  %v1958_v62 = vpop.f32.mrb[23].mxu1 }
 0x56f   : > { %v1281_v63 = vadd.f32 %v2948_v0, %v1276_v59  ;;  %v1978_v1 = vpop.f32.mrb[27].mxu0  ;;  %v2172_v0 = vld [vmem:[#allocation14 + $0x18] sm:$0xff] (!%p1577_p5)  }
 0x570   : > { %1986 = vmatpush3.bf16.msra.mxu0 (!%p1577_p5), %v2172_v0 }
 0x571   : > { %2167 = vtanh.f32 %v1281_v63  ;;  %1987 = vmatprep.subr.bf16.mxu0 (!%p1577_p5), %v2454_v12 }
 0x574   : > { %1988 = vmatpush3.bf16.msra.mxu0 (!%p1577_p5), %v2173_v15 }
 0x575   : > { %1989 = vmatprep.subr.bf16.mxu0 (!%p1577_p5), %v2454_v12 }
 0x578   : > { %1990 = vmatpush3.bf16.msra.mxu0 (!%p1577_p5), %v2174_v17 }
 0x579   : > { %1991 = vmatprep.subr.bf16.mxu0 (!%p1577_p5), %v2454_v12 }
 0x57a   : > { %1291 = sbr.rel (%p1577_p5) target bundleno = 1626 (0x65a), region = 88 }
 0x57b   : > { %v2168_v4 = vpop.eup %2167 }
 0x57c   : > { %v1283_v6 = vpack.c.bf16 %v2168_v4, %v2168_v4  ;;  %1992 = vmatpush3.bf16.msra.mxu0 (!%p1577_p5), %v2175_v19 }
 0x57d   : > { %1993 = vmatprep.subr.bf16.mxu0 (!%p1577_p5), %v2454_v12 }
 0x57e   : > { %v1286_v8 = vunpack.c.l.bf16 %v1283_v6 }
 0x580   : > { %1287 = vst [vmem:[#allocation4] sm:$0xff] %v1286_v8  ;;  %1994 = vmatpush3.bf16.msra.mxu0 (!%p1577_p5), %v2176_v21 }
 0x583   : > { %1996 = vmatmul.mubr.bf16.vlgmr.msra.gmra.mrb[0].mxu0 %v1283_v6 }
 0x656   : > { %v1397_v23 = vpop.f32.mrb[0].mxu0 }
 0x657   : > { %v1398_v25 = vadd.f32 %v1578_v22, %v1397_v23  ;;  %v1997_v26 = vpop.f32.mrb[1].mxu0 }
 0x658   : > { %v1400_v37 = vpop.f32.mrb[2].mxu0 }
 0x659   : > { %1403 = vst [vmem:[#allocation16] sm:$0xff] %v1398_v25  ;;  %v1998_v38 = vpop.f32.mrb[3].mxu0 }
 0x65a PF: > { %s3144_s28 = sadd.s32 4294967295, %s2439_s14   ;;  %s2456_s15 = smov [#allocation16]  }
 0x65b   : > { %p3068_p11 = scmp.eq.s32.totalorder %s3144_s28, 1  ;;  %s1413_s29 = sshll.u32 %s2456_s15, 4  ;;  %s1414_s29 = int_to_ptr.vmem [resolvable:$true] %s1413_s29 }
 0x65c   : > { %s2347_s21 = scalar_lea.vmem %s1414_s29, 128  ;;  %p2354_p2 = scmp.lt.s32.totalorder %s1414_s29, %s1414_s29 }
 0x65d   : > { %p2348_p12 = scmp.ne.s32.totalorder %s1414_s29, %s2347_s21  ;;  %p2355_p6 = scmp.lt.s32.totalorder %s2347_s21, %s2347_s21 }
 0x65f   : > { %p2349_p13 = pnand %p2348_p12, %p3068_p11  ;;  %p2356_p9 = por %p2355_p6, %p2354_p2 }
 0x661   : > { %p2350_p0 = pneg %p2349_p13 }
 0x663   : > { %p2357_p7 = pnand %p2356_p9, %p2350_p0 }
 0x665   : > { %2360 = shalt.err (!%p2357_p7)
}
 0x666   : > { %s3146_s24 = sld [smem:[#allocation25_spill]] }
 0x66c   : > { %s2361_s18 = scalar_lea.hbm %s3146_s24, 128 }
 0x66d   : > { %p2362_p1 = scmp.ne.s32.totalorder %s3146_s24, %s2361_s18  ;;  %p2367_p10 = scmp.lt.u32.totalorder %s2361_s18, %s3146_s24 }
 0x66f   : > { %p2363_p3 = pnand %p2362_p1, %p3068_p11 }
 0x671   : > { %p2364_p8 = pneg %p2363_p3 }
 0x673   : > { %p2369_p4 = pnand %p2367_p10, %p2364_p8 }
 0x675   : > { %2372 = shalt.err (!%p2369_p4)
}
 0x676   : > { %2022 = dma.vmem_to_hbm [thread:$0]  (%p3068_p11), %s1414_s29, 128, %s3146_s24, [#allocation7]  }
 0x677   : > { %2414 = dma.done.wait (%p3068_p11), [#allocation7], 128  }
 0x678   : > { %2416 = vsyncadd (%p3068_p11), [#allocation7], 4294967168 }
 0x679 PF: > { %s26_s14 = sadd.s32 1, %s2439_s14   ;;  %s3147_s30 = smov %s2423_s10 }
 0x67a   : > { %p23_p5 = scmp.ge.s32.totalorder %s26_s14, 4   ;;  %s3148_s10 = smov %s2427_s11 }
 0x67b   : > { %s3149_s11 = smov %s2711_s8  ;;  %s3150_s12 = smov %s2435_s13 }
 0x67c   : > { %s3151_s13 = smov %s3153_s20  ;;  %25 = sbr.rel (!%p23_p5) target bundleno = 13 (0xd), region = 125 }
 0x683   :  { %1426 = vsyncpa [#allocation6], 1 }
 0x684   :  { %1428 = vsyncpa [#allocation6 + $0x1], 1 }
 0x685   :  { %1429 = vsyncpa [#allocation9], 1 }
 0x686   :  { %1430 = vsyncpa [#allocation12], 1 }
 0x687   :  { %1431 = vsyncpa [#allocation15], 1 }
 0x688   :  { %1432 = vsyncpa [#allocation7], 1 }
 0x689   :  { %1434 = vsyncpa [#allocation7 + $0x1], 1 }

</bundles_post_ra>
